<compile_context>
chip_gen: v5e
topology: v5e:2x2
jax: 0.10.0
libtpu: 0.0.40
codegen_flags: <defaults>
</compile_context>

<pallas_src>
import functools
import math

import jax
import jax.numpy as jnp
from jax.experimental import pallas as pl


def mha_kernel(x_ref, wq_ref, wk_ref, wv_ref, wo_ref, bo_ref, o_ref, *, num_heads):
    """Fused MHA over the whole (small) batch in one invocation.

    x_ref : (B, S, D)
    wq/wk/wv_ref : (G, D, d_k)   per-(head, batch) projection weights, g = h*B + b
                                 (scale 1/sqrt(d_k) already folded into W_q)
    wo_ref: (G, d_k, D)          per-(head, batch) output-projection weight
    bo_ref: (1, D)               output-projection bias
    o_ref : (B, S, D)
    """
    B, S, D = x_ref.shape
    H = num_heads
    G = H * B

    x = x_ref[...]                                                    # (B, S, D)

    # Replicate activations across heads on a new MAJOR axis (cheap copy, no
    # lane/sublane shuffles), then merge (H, B) -> G so every contraction below
    # is a canonical batched matmul.
    xg = jnp.broadcast_to(x[None], (H, B, S, D)).reshape(G, S, D)     # (G, S, D)

    # Head/batch-batched QKV projections (scale folded into wq in the wrapper).
    q = jnp.einsum('gsd,gdk->gsk', xg, wq_ref[...],
                   preferred_element_type=jnp.float32)                # (G, S, d_k)
    k = jnp.einsum('gsd,gdk->gsk', xg, wk_ref[...],
                   preferred_element_type=jnp.float32)
    v = jnp.einsum('gsd,gdk->gsk', xg, wv_ref[...],
                   preferred_element_type=jnp.float32)

    # Attention core, batched over G = H*B groups.
    s = jnp.einsum('gqd,gkd->gqk', q, k,
                   preferred_element_type=jnp.float32)                # (G, S, S)
    m = jnp.max(s, axis=-1, keepdims=True)
    p = jnp.exp(s - m)
    denom = jnp.sum(p, axis=-1, keepdims=True)
    attn = p * pl.reciprocal(denom, approx=True)   # EUP reciprocal, no VPU divide
    # dropout on attention weights: identity (eval mode)

    ctx = jnp.einsum('gqk,gkd->gqd', attn, v,
                     preferred_element_type=jnp.float32)              # (G, S, d_k)

    # Output projection per group, then reduce over heads (leading, major axis).
    out_g = jnp.einsum('gsk,gkd->gsd', ctx, wo_ref[...],
                       preferred_element_type=jnp.float32)            # (G, S, D)
    out = jnp.sum(out_g.reshape(H, B, S, D), axis=0) + bo_ref[...]    # (B, S, D)

    o_ref[...] = out.astype(o_ref.dtype)


def multi_head_attention(x, wq_t, wk_t, wv_t, wo_t, bo, *, num_heads):
    """x: (B, S, D).  w*_t: (D, D) stored (in, out) so y = x @ W.  bo: (1, D)."""
    B, S, D = x.shape
    assert D % num_heads == 0
    H = num_heads
    d_k = D // H
    G = H * B
    scale = 1.0 / math.sqrt(d_k)

    # (D, D) -> (H, D, d_k): head h owns output columns [h*d_k : (h+1)*d_k].
    def split_heads(w_t):
        return w_t.reshape(D, H, d_k).transpose(1, 0, 2)

    # (H, ...) -> (G, ...), g = h*B + b  (one-time XLA-land layout plumbing).
    def rep_over_batch(w):
        return jnp.broadcast_to(w[:, None], (H, B) + w.shape[1:]).reshape(
            (G,) + w.shape[1:])

    wq_g = rep_over_batch(split_heads(wq_t) * scale)   # scale folded into Q
    wk_g = rep_over_batch(split_heads(wk_t))
    wv_g = rep_over_batch(split_heads(wv_t))
    wo_g = rep_over_batch(wo_t.reshape(H, d_k, D))     # (G, d_k, D)

    kernel = functools.partial(mha_kernel, num_heads=H)

    return pl.pallas_call(
        kernel,
        out_shape=jax.ShapeDtypeStruct((B, S, D), x.dtype),
        grid=(1,),                                     # single invocation: B folded in
        in_specs=[
            pl.BlockSpec((B, S, D), lambda i: (0, 0, 0)),      # x
            pl.BlockSpec((G, D, d_k), lambda i: (0, 0, 0)),    # W_q per (head, batch)
            pl.BlockSpec((G, D, d_k), lambda i: (0, 0, 0)),    # W_k
            pl.BlockSpec((G, D, d_k), lambda i: (0, 0, 0)),    # W_v
            pl.BlockSpec((G, d_k, D), lambda i: (0, 0, 0)),    # W_o per (head, batch)
            pl.BlockSpec((1, D), lambda i: (0, 0)),            # b_o
        ],
        out_specs=pl.BlockSpec((B, S, D), lambda i: (0, 0, 0)),
    )(x, wq_g, wk_g, wv_g, wo_g, bo)


def mha_reference(x, wq_t, wk_t, wv_t, wo_t, bo, *, num_heads):
    """Pure-JAX reference mirroring the PyTorch forward (eval mode)."""
    B, S, D = x.shape
    d_k = D // num_heads
    q = x @ wq_t
    k = x @ wk_t
    v = x @ wv_t
    q = q.reshape(B, S, num_heads, d_k).transpose(0, 2, 1, 3)
    k = k.reshape(B, S, num_heads, d_k).transpose(0, 2, 1, 3)
    v = v.reshape(B, S, num_heads, d_k).transpose(0, 2, 1, 3)
    scores = jnp.einsum('bhqd,bhkd->bhqk', q, k) / math.sqrt(d_k)
    attn = jax.nn.softmax(scores, axis=-1)
    out = jnp.einsum('bhqk,bhkd->bhqd', attn, v)
    out = out.transpose(0, 2, 1, 3).reshape(B, S, D)
    return out @ wo_t + bo


if __name__ == "__main__":
    # Small shapes consistent with the module: d_model=32, num_heads=8 (d_k=4).
    B, S, D, H = 2, 16, 32, 8

    key = jax.random.PRNGKey(0)
    kx, kq, kk, kv, ko, kb = jax.random.split(key, 6)

    x = jax.random.normal(kx, (B, S, D), dtype=jnp.float32)

    # Deterministic "nn.Linear"-like params.  PyTorch stores (out, in); we keep
    # them pre-transposed to (in, out) for y = x @ W.
    lim = 1.0 / math.sqrt(D)
    wq_t = jax.random.uniform(kq, (D, D), minval=-lim, maxval=lim, dtype=jnp.float32)
    wk_t = jax.random.uniform(kk, (D, D), minval=-lim, maxval=lim, dtype=jnp.float32)
    wv_t = jax.random.uniform(kv, (D, D), minval=-lim, maxval=lim, dtype=jnp.float32)
    wo_t = jax.random.uniform(ko, (D, D), minval=-lim, maxval=lim, dtype=jnp.float32)
    bo = jax.random.uniform(kb, (1, D), minval=-lim, maxval=lim, dtype=jnp.float32)

    out = multi_head_attention(x, wq_t, wk_t, wv_t, wo_t, bo, num_heads=H)
    out = jax.block_until_ready(out)

    ref = mha_reference(x, wq_t, wk_t, wv_t, wo_t, bo, num_heads=H)
    assert out.shape == (B, S, D)
    # Slightly looser tolerance: kernel softmax uses the approximate EUP reciprocal.
    assert jnp.allclose(out, ref, atol=1e-2, rtol=1e-2), "mismatch vs reference"

    print("KERNEL_OK")
</pallas_src>

<mosaic_0001>
module attributes {stable_mosaic.version = 11 : i64} {
  func.func @mha_kernel(%arg0: i32, %arg1: memref<2x16x32xf32, #tpu.memory_space<vmem>>, %arg2: memref<16x32x4xf32, #tpu.memory_space<vmem>>, %arg3: memref<16x32x4xf32, #tpu.memory_space<vmem>>, %arg4: memref<16x32x4xf32, #tpu.memory_space<vmem>>, %arg5: memref<16x4x32xf32, #tpu.memory_space<vmem>>, %arg6: memref<1x32xf32, #tpu.memory_space<vmem>>, %arg7: memref<2x16x32xf32, #tpu.memory_space<vmem>>) attributes {dimension_semantics = [#tpu.dimension_semantics<arbitrary>], iteration_bounds = array<i64: 1>, scalar_prefetch = 0 : i64, scratch_operands = 0 : i64, tpu.core_type = #tpu.core_type<tc>, window_params = [{pipeline_mode = #tpu.pipeline_mode<synchronous>, transform_indices = @transform_0, window_bounds = array<i64: 2, 16, 32>}, {pipeline_mode = #tpu.pipeline_mode<synchronous>, transform_indices = @transform_1, window_bounds = array<i64: 16, 32, 4>}, {pipeline_mode = #tpu.pipeline_mode<synchronous>, transform_indices = @transform_2, window_bounds = array<i64: 16, 32, 4>}, {pipeline_mode = #tpu.pipeline_mode<synchronous>, transform_indices = @transform_3, window_bounds = array<i64: 16, 32, 4>}, {pipeline_mode = #tpu.pipeline_mode<synchronous>, transform_indices = @transform_4, window_bounds = array<i64: 16, 4, 32>}, {pipeline_mode = #tpu.pipeline_mode<synchronous>, transform_indices = @transform_5, window_bounds = array<i64: 1, 32>}, {pipeline_mode = #tpu.pipeline_mode<synchronous>, transform_indices = @transform_6, window_bounds = array<i64: 2, 16, 32>}]} {
    %c0 = arith.constant 0 : index
    %c0_0 = arith.constant 0 : index
    %c0_1 = arith.constant 0 : index
    %0 = vector.load %arg1[%c0, %c0_0, %c0_1] : memref<2x16x32xf32, #tpu.memory_space<vmem>>, vector<2x16x32xf32>
    %1 = vector.shape_cast %0 : vector<2x16x32xf32> to vector<1x2x16x32xf32>
    %2 = vector.shape_cast %1 : vector<1x2x16x32xf32> to vector<1x2x16x32xf32>
    %3 = vector.broadcast %2 : vector<1x2x16x32xf32> to vector<8x2x16x32xf32>
    %4 = vector.shape_cast %3 : vector<8x2x16x32xf32> to vector<16x16x32xf32>
    %c0_2 = arith.constant 0 : index
    %c0_3 = arith.constant 0 : index
    %c0_4 = arith.constant 0 : index
    %5 = vector.load %arg2[%c0_2, %c0_3, %c0_4] : memref<16x32x4xf32, #tpu.memory_space<vmem>>, vector<16x32x4xf32>
    "tpu.trace_start"() <{level = 10 : i32, message = "gsd,gdk->gsk"}> : () -> ()
    %cst = arith.constant dense<0.000000e+00> : vector<16x16x4xf32>
    %6 = tpu.matmul %4, %5, %cst {dimension_numbers = #tpu.dot_dimension_numbers<[2], [1], [1], [2], [0, 0, 0, 1, 1, 2], [0], [0]>} : vector<16x16x32xf32>, vector<16x32x4xf32>, vector<16x16x4xf32> -> vector<16x16x4xf32>
    "tpu.trace_stop"() : () -> ()
    %c0_5 = arith.constant 0 : index
    %c0_6 = arith.constant 0 : index
    %c0_7 = arith.constant 0 : index
    %7 = vector.load %arg3[%c0_5, %c0_6, %c0_7] : memref<16x32x4xf32, #tpu.memory_space<vmem>>, vector<16x32x4xf32>
    "tpu.trace_start"() <{level = 10 : i32, message = "gsd,gdk->gsk"}> : () -> ()
    %cst_8 = arith.constant dense<0.000000e+00> : vector<16x16x4xf32>
    %8 = tpu.matmul %4, %7, %cst_8 {dimension_numbers = #tpu.dot_dimension_numbers<[2], [1], [1], [2], [0, 0, 0, 1, 1, 2], [0], [0]>} : vector<16x16x32xf32>, vector<16x32x4xf32>, vector<16x16x4xf32> -> vector<16x16x4xf32>
    "tpu.trace_stop"() : () -> ()
    %c0_9 = arith.constant 0 : index
    %c0_10 = arith.constant 0 : index
    %c0_11 = arith.constant 0 : index
    %9 = vector.load %arg4[%c0_9, %c0_10, %c0_11] : memref<16x32x4xf32, #tpu.memory_space<vmem>>, vector<16x32x4xf32>
    "tpu.trace_start"() <{level = 10 : i32, message = "gsd,gdk->gsk"}> : () -> ()
    %cst_12 = arith.constant dense<0.000000e+00> : vector<16x16x4xf32>
    %10 = tpu.matmul %4, %9, %cst_12 {dimension_numbers = #tpu.dot_dimension_numbers<[2], [1], [1], [2], [0, 0, 0, 1, 1, 2], [0], [0]>} : vector<16x16x32xf32>, vector<16x32x4xf32>, vector<16x16x4xf32> -> vector<16x16x4xf32>
    "tpu.trace_stop"() : () -> ()
    "tpu.trace_start"() <{level = 10 : i32, message = "gqd,gkd->gqk"}> : () -> ()
    %cst_13 = arith.constant dense<0.000000e+00> : vector<16x16x16xf32>
    %11 = tpu.matmul %6, %8, %cst_13 {dimension_numbers = #tpu.dot_dimension_numbers<[2], [2], [1], [1], [0, 0, 0, 1, 1, 1], [0], [0]>} : vector<16x16x4xf32>, vector<16x16x4xf32>, vector<16x16x16xf32> -> vector<16x16x16xf32>
    "tpu.trace_stop"() : () -> ()
    %cst_14 = arith.constant dense<0xFF800000> : vector<16x16xf32>
    %12 = vector.multi_reduction <maximumf>, %11, %cst_14 [2] : vector<16x16x16xf32> to vector<16x16xf32>
    %13 = vector.shape_cast %12 : vector<16x16xf32> to vector<16x16x1xf32>
    %14 = vector.broadcast %13 : vector<16x16x1xf32> to vector<16x16x16xf32>
    %15 = arith.subf %11, %14 : vector<16x16x16xf32>
    %16 = math.exp %15 : vector<16x16x16xf32>
    %cst_15 = arith.constant dense<0.000000e+00> : vector<16x16xf32>
    %17 = vector.multi_reduction <add>, %16, %cst_15 [2] : vector<16x16x16xf32> to vector<16x16xf32>
    %18 = vector.shape_cast %17 : vector<16x16xf32> to vector<16x16x1xf32>
    %19 = tpu.reciprocal %18 {approx = true} : vector<16x16x1xf32> -> vector<16x16x1xf32>
    %20 = vector.broadcast %19 : vector<16x16x1xf32> to vector<16x16x16xf32>
    %21 = arith.mulf %16, %20 : vector<16x16x16xf32>
    "tpu.trace_start"() <{level = 10 : i32, message = "gqk,gkd->gqd"}> : () -> ()
    %cst_16 = arith.constant dense<0.000000e+00> : vector<16x16x4xf32>
    %22 = tpu.matmul %21, %10, %cst_16 {dimension_numbers = #tpu.dot_dimension_numbers<[2], [1], [1], [2], [0, 0, 0, 1, 1, 2], [0], [0]>} : vector<16x16x16xf32>, vector<16x16x4xf32>, vector<16x16x4xf32> -> vector<16x16x4xf32>
    "tpu.trace_stop"() : () -> ()
    %c0_17 = arith.constant 0 : index
    %c0_18 = arith.constant 0 : index
    %c0_19 = arith.constant 0 : index
    %23 = vector.load %arg5[%c0_17, %c0_18, %c0_19] : memref<16x4x32xf32, #tpu.memory_space<vmem>>, vector<16x4x32xf32>
    "tpu.trace_start"() <{level = 10 : i32, message = "gsk,gkd->gsd"}> : () -> ()
    %cst_20 = arith.constant dense<0.000000e+00> : vector<16x16x32xf32>
    %24 = tpu.matmul %22, %23, %cst_20 {dimension_numbers = #tpu.dot_dimension_numbers<[2], [1], [1], [2], [0, 0, 0, 1, 1, 2], [0], [0]>} : vector<16x16x4xf32>, vector<16x4x32xf32>, vector<16x16x32xf32> -> vector<16x16x32xf32>
    "tpu.trace_stop"() : () -> ()
    %25 = vector.shape_cast %24 : vector<16x16x32xf32> to vector<8x2x16x32xf32>
    %cst_21 = arith.constant dense<0.000000e+00> : vector<2x16x32xf32>
    %26 = vector.multi_reduction <add>, %25, %cst_21 [0] : vector<8x2x16x32xf32> to vector<2x16x32xf32>
    %c0_22 = arith.constant 0 : index
    %c0_23 = arith.constant 0 : index
    %27 = vector.load %arg6[%c0_22, %c0_23] : memref<1x32xf32, #tpu.memory_space<vmem>>, vector<1x32xf32>
    %28 = vector.shape_cast %27 : vector<1x32xf32> to vector<1x1x32xf32>
    %29 = vector.broadcast %28 : vector<1x1x32xf32> to vector<2x16x32xf32>
    %30 = arith.addf %26, %29 : vector<2x16x32xf32>
    %c0_24 = arith.constant 0 : index
    %c0_25 = arith.constant 0 : index
    %c0_26 = arith.constant 0 : index
    %31 = vector.load %arg7[%c0_24, %c0_25, %c0_26] : memref<2x16x32xf32, #tpu.memory_space<vmem>>, vector<2x16x32xf32>
    tpu.vector_store %arg7[%c0_24, %c0_25, %c0_26], %30 {strides = array<i32>} : memref<2x16x32xf32, #tpu.memory_space<vmem>>, vector<2x16x32xf32>,
    return
  }
  func.func @transform_0(%arg0: i32) -> (i32, i32, i32) {
    %c0_i32 = arith.constant 0 : i32
    %c0_i32_0 = arith.constant 0 : i32
    %c0_i32_1 = arith.constant 0 : i32
    %c0_i32_2 = arith.constant 0 : i32
    return %c0_i32, %c0_i32_0, %c0_i32_1 : i32, i32, i32
  }
  func.func @transform_1(%arg0: i32) -> (i32, i32, i32) {
    %c0_i32 = arith.constant 0 : i32
    %c0_i32_0 = arith.constant 0 : i32
    %c0_i32_1 = arith.constant 0 : i32
    %c0_i32_2 = arith.constant 0 : i32
    return %c0_i32, %c0_i32_0, %c0_i32_1 : i32, i32, i32
  }
  func.func @transform_2(%arg0: i32) -> (i32, i32, i32) {
    %c0_i32 = arith.constant 0 : i32
    %c0_i32_0 = arith.constant 0 : i32
    %c0_i32_1 = arith.constant 0 : i32
    %c0_i32_2 = arith.constant 0 : i32
    return %c0_i32, %c0_i32_0, %c0_i32_1 : i32, i32, i32
  }
  func.func @transform_3(%arg0: i32) -> (i32, i32, i32) {
    %c0_i32 = arith.constant 0 : i32
    %c0_i32_0 = arith.constant 0 : i32
    %c0_i32_1 = arith.constant 0 : i32
    %c0_i32_2 = arith.constant 0 : i32
    return %c0_i32, %c0_i32_0, %c0_i32_1 : i32, i32, i32
  }
  func.func @transform_4(%arg0: i32) -> (i32, i32, i32) {
    %c0_i32 = arith.constant 0 : i32
    %c0_i32_0 = arith.constant 0 : i32
    %c0_i32_1 = arith.constant 0 : i32
    %c0_i32_2 = arith.constant 0 : i32
    return %c0_i32, %c0_i32_0, %c0_i32_1 : i32, i32, i32
  }
  func.func @transform_5(%arg0: i32) -> (i32, i32) {
    %c0_i32 = arith.constant 0 : i32
    %c0_i32_0 = arith.constant 0 : i32
    %c0_i32_1 = arith.constant 0 : i32
    return %c0_i32, %c0_i32_0 : i32, i32
  }
  func.func @transform_6(%arg0: i32) -> (i32, i32, i32) {
    %c0_i32 = arith.constant 0 : i32
    %c0_i32_0 = arith.constant 0 : i32
    %c0_i32_1 = arith.constant 0 : i32
    %c0_i32_2 = arith.constant 0 : i32
    return %c0_i32, %c0_i32_0, %c0_i32_1 : i32, i32, i32
  }
}

</mosaic_0001>

<bundles_post_ra>
// kernel: tpu_custom_call.1
= control target key start
LH: loop header
LB: loop body
LE: loop exit
PB: predicated region body
PF: predicated region fallthrough
CT: control target
= control target key end

     0   :  { %vm92_vm0 = vcmask 261120   ;;  %s5256_s0 = inlined_call_operand.vmem [shape: f32[2,16,32], index: 0, kind: input, shape index: {}]   ;;  %s5257_s1 = inlined_call_operand.vmem [shape: f32[16,32,4], index: 1, kind: input, shape index: {}]   ;;  %s5258_s2 = inlined_call_operand.vmem [shape: f32[16,32,4], index: 2, kind: input, shape index: {}]   ;;  %s5259_s3 = inlined_call_operand.vmem [shape: f32[16,32,4], index: 3, kind: input, shape index: {}]   ;;  %s5260_s4 = inlined_call_operand.vmem [shape: f32[16,4,32], index: 4, kind: input, shape index: {}]   ;;  %s5261_s5 = inlined_call_operand.vmem [shape: f32[1,32], index: 5, kind: input, shape index: {}]   ;;  %s5262_s6 = inlined_call_operand.hbm [shape: f32[2,16,32], index: 6, kind: output, shape index: {}]  }
   0x1   :  { %v31_v0 = vld [vmem:[%s5257_s1 + $0x18] sm:$0xff]  ;;  %v30_v4 = vld [vmem:[%s5257_s1 + $0x10] sm:$0xff]  ;;  %v29_v8 = vld [vmem:[%s5257_s1 + $0x8] sm:$0xff] }
   0x2   :  { %v35_v1 = vld [vmem:[%s5257_s1 + $0x38] sm:$0xff]  ;;  %111 = vmatpush.msra.mxu0 %v31_v0  ;;  %v34_v5 = vld [vmem:[%s5257_s1 + $0x30] sm:$0xff]  ;;  %v33_v9 = vld [vmem:[%s5257_s1 + $0x28] sm:$0xff] }
   0x3   :  { %v39_v2 = vld [vmem:[%s5257_s1 + $0x58] sm:$0xff]  ;;  %140 = vmatpush.msra.mxu1 %v35_v1  ;;  %v38_v6 = vld [vmem:[%s5257_s1 + $0x50] sm:$0xff]  ;;  %v37_v10 = vld [vmem:[%s5257_s1 + $0x48] sm:$0xff] }
   0x4   :  { %v43_v3 = vld [vmem:[%s5257_s1 + $0x78] sm:$0xff]  ;;  %163 = vmatpush.msra.mxu2 %v39_v2  ;;  %v42_v7 = vld [vmem:[%s5257_s1 + $0x70] sm:$0xff]  ;;  %112 = vmatpush.msra.mxu0 %v30_v4  ;;  %v41_v11 = vld [vmem:[%s5257_s1 + $0x68] sm:$0xff] }
   0x5   :  { %186 = vmatpush.msra.mxu3 %v43_v3  ;;  %141 = vmatpush.msra.mxu1 %v34_v5  ;;  %v28_v12 = vld [vmem:[%s5257_s1] sm:$0xff]  ;;  %v3826_v17 = vld [vmem:[%s5256_s0 + $0x10] sm:$0xff]  ;;  %v47_v18 = vld [vmem:[%s5257_s1 + $0x98] sm:$0xff] }
   0x6   :  { %164 = vmatpush.msra.mxu2 %v38_v6  ;;  %v32_v13 = vld [vmem:[%s5257_s1 + $0x20] sm:$0xff]  ;;  %113 = vmatpush.msra.mxu0 %v29_v8  ;;  %v51_v19 = vld [vmem:[%s5257_s1 + $0xb8] sm:$0xff]  ;;  %v46_v22 = vld [vmem:[%s5257_s1 + $0x90] sm:$0xff] }
   0x7   :  { %187 = vmatpush.msra.mxu3 %v42_v7  ;;  %142 = vmatpush.msra.mxu1 %v33_v9  ;;  %v36_v14 = vld [vmem:[%s5257_s1 + $0x40] sm:$0xff]  ;;  %v55_v20 = vld [vmem:[%s5257_s1 + $0xd8] sm:$0xff]  ;;  %v50_v23 = vld [vmem:[%s5257_s1 + $0xb0] sm:$0xff] }
   0x8   :  { %v40_v15 = vld [vmem:[%s5257_s1 + $0x60] sm:$0xff]  ;;  %165 = vmatpush.msra.mxu2 %v37_v10  ;;  %114 = vmatpush.msra.mxu0 %v28_v12  ;;  %v59_v21 = vld [vmem:[%s5257_s1 + $0xf8] sm:$0xff]  ;;  %v54_v24 = vld [vmem:[%s5257_s1 + $0xd0] sm:$0xff] }
   0x9   :  { %188 = vmatpush.msra.mxu3 %v41_v11  ;;  %v3821_v16 = vld [vmem:[%s5256_s0] sm:$0xff]  ;;  %143 = vmatpush.msra.mxu1 %v32_v13  ;;  %v58_v25 = vld [vmem:[%s5257_s1 + $0xf0] sm:$0xff]  ;;  %v45_v26 = vld [vmem:[%s5257_s1 + $0x88] sm:$0xff] }
   0xa   :  { %166 = vmatpush.msra.mxu2 %v36_v14  ;;  %3334 = vmatmul.msk.f32.vlgmr.msra.gmra.mxu0 %vm92_vm0, %v3821_v16  ;;  %v49_v27 = vld [vmem:[%s5257_s1 + $0xa8] sm:$0xff]  ;;  %v3880_v31 = vld [vmem:[%s5256_s0 + $0x18] sm:$0xff]  ;;  %v44_v32 = vld [vmem:[%s5257_s1 + $0x80] sm:$0xff] }
   0xb   :  { %189 = vmatpush.msra.mxu3 %v40_v15  ;;  %3336 = vmatmul.msk.f32.vlgmr.msra.gmra.mxu1 %vm92_vm0, %v3826_v17  ;;  %v53_v28 = vld [vmem:[%s5257_s1 + $0xc8] sm:$0xff]  ;;  %v48_v33 = vld [vmem:[%s5257_s1 + $0xa0] sm:$0xff] }
   0xc   :  { %3338 = vmatmul.msk.f32.vlgmr.msra.gmra.mxu2 %vm92_vm0, %v3821_v16  ;;  %3340 = vmatmul.msk.f32.vlgmr.msra.gmra.mxu3 %vm92_vm0, %v3826_v17  ;;  %v57_v29 = vld [vmem:[%s5257_s1 + $0xe8] sm:$0xff]  ;;  %v52_v34 = vld [vmem:[%s5257_s1 + $0xc0] sm:$0xff] }
   0xd   :  { %209 = vmatpush.msrb.mxu0 %v47_v18  ;;  %232 = vmatpush.msrb.mxu1 %v51_v19  ;;  %v3875_v30 = vld [vmem:[%s5256_s0 + $0x8] sm:$0xff]  ;;  %v56_v35 = vld [vmem:[%s5257_s1 + $0xe0] sm:$0xff] }
   0xe   :  { %255 = vmatpush.msrb.mxu2 %v55_v20  ;;  %278 = vmatpush.msrb.mxu3 %v59_v21 }
   0xf   :  { %210 = vmatpush.msrb.mxu0 %v46_v22  ;;  %233 = vmatpush.msrb.mxu1 %v50_v23 }
  0x10   :  { %256 = vmatpush.msrb.mxu2 %v54_v24  ;;  %279 = vmatpush.msrb.mxu3 %v58_v25 }
  0x11   :  { %211 = vmatpush.msrb.mxu0 %v45_v26  ;;  %234 = vmatpush.msrb.mxu1 %v49_v27 }
  0x12   :  { %257 = vmatpush.msrb.mxu2 %v53_v28  ;;  %280 = vmatpush.msrb.mxu3 %v57_v29 }
  0x13   :  { %3335 = vmatmul.msk.f32.gmra.mxu0 %vm92_vm0, %v3875_v30  ;;  %3337 = vmatmul.msk.f32.gmra.mxu1 %vm92_vm0, %v3880_v31 }
  0x14   :  { %11 = vsyncpa [#allocation3], 0  ;;  %3339 = vmatmul.msk.f32.gmra.mxu2 %vm92_vm0, %v3875_v30  ;;  %3341 = vmatmul.msk.f32.gmra.mxu3 %vm92_vm0, %v3880_v31  ;;  %v63_v36 = vld [vmem:[%s5257_s1 + $0x118] sm:$0xff]  ;;  %v62_v40 = vld [vmem:[%s5257_s1 + $0x110] sm:$0xff]  ;;  %vm1337_vm1 = vcmask 31744   ;;  %vm1898_vm2 = vcmask 130048  }
  0x15   :  { %v67_v37 = vld [vmem:[%s5257_s1 + $0x138] sm:$0xff]  ;;  %212 = vmatpush.msrb.mxu0 %v44_v32  ;;  %235 = vmatpush.msrb.mxu1 %v48_v33  ;;  %v66_v41 = vld [vmem:[%s5257_s1 + $0x130] sm:$0xff]  ;;  %v61_v44 = vld [vmem:[%s5257_s1 + $0x108] sm:$0xff]  ;;  %vm2737_vm3 = vcmask 1043456   ;;  %s3322_s8 = sshll.u32 %s5262_s6, 4  ;;  %s3733_s9 = smov 128   ;;  %s3323_s8 = int_to_ptr.hbm [resolvable:$true] %s3322_s8 }
  0x16   :  { %v71_v38 = vld [vmem:[%s5257_s1 + $0x158] sm:$0xff]  ;;  %258 = vmatpush.msrb.mxu2 %v52_v34  ;;  %281 = vmatpush.msrb.mxu3 %v56_v35  ;;  %v70_v42 = vld [vmem:[%s5257_s1 + $0x150] sm:$0xff]  ;;  %v65_v45 = vld [vmem:[%s5257_s1 + $0x128] sm:$0xff] }
  0x17   :  { %v75_v39 = vld [vmem:[%s5257_s1 + $0x178] sm:$0xff]  ;;  %301 = vmatpush.msra.mxu0 %v63_v36  ;;  %324 = vmatpush.msra.mxu1 %v67_v37  ;;  %v74_v43 = vld [vmem:[%s5257_s1 + $0x170] sm:$0xff]  ;;  %v69_v46 = vld [vmem:[%s5257_s1 + $0x148] sm:$0xff] }
  0x18   :  { %347 = vmatpush.msra.mxu2 %v71_v38  ;;  %370 = vmatpush.msra.mxu3 %v75_v39  ;;  %v73_v47 = vld [vmem:[%s5257_s1 + $0x168] sm:$0xff]  ;;  %v60_v48 = vld [vmem:[%s5257_s1 + $0x100] sm:$0xff]  ;;  %v79_v52 = vld [vmem:[%s5257_s1 + $0x198] sm:$0xff] }
  0x19   :  { %302 = vmatpush.msra.mxu0 %v62_v40  ;;  %325 = vmatpush.msra.mxu1 %v66_v41  ;;  %v64_v49 = vld [vmem:[%s5257_s1 + $0x120] sm:$0xff]  ;;  %v83_v53 = vld [vmem:[%s5257_s1 + $0x1b8] sm:$0xff]  ;;  %v78_v56 = vld [vmem:[%s5257_s1 + $0x190] sm:$0xff] }
  0x1a   :  { %348 = vmatpush.msra.mxu2 %v70_v42  ;;  %371 = vmatpush.msra.mxu3 %v74_v43  ;;  %v68_v50 = vld [vmem:[%s5257_s1 + $0x140] sm:$0xff]  ;;  %v87_v54 = vld [vmem:[%s5257_s1 + $0x1d8] sm:$0xff]  ;;  %v82_v57 = vld [vmem:[%s5257_s1 + $0x1b0] sm:$0xff] }
  0x1b   :  { %3342 = vmatmul.msk.f32.vlgmr.msrb.gmra.mxu0 %vm92_vm0, %v3821_v16  ;;  %3344 = vmatmul.msk.f32.vlgmr.msrb.gmra.mxu1 %vm92_vm0, %v3826_v17  ;;  %v72_v51 = vld [vmem:[%s5257_s1 + $0x160] sm:$0xff]  ;;  %v91_v55 = vld [vmem:[%s5257_s1 + $0x1f8] sm:$0xff]  ;;  %v86_v58 = vld [vmem:[%s5257_s1 + $0x1d0] sm:$0xff] }
  0x1c   :  { %3346 = vmatmul.msk.f32.vlgmr.msrb.gmra.mxu2 %vm92_vm0, %v3821_v16  ;;  %3348 = vmatmul.msk.f32.vlgmr.msrb.gmra.mxu3 %vm92_vm0, %v3826_v17  ;;  %v90_v59 = vld [vmem:[%s5257_s1 + $0x1f0] sm:$0xff]  ;;  %v77_v60 = vld [vmem:[%s5257_s1 + $0x188] sm:$0xff]  ;;  %v76_v0 = vld [vmem:[%s5257_s1 + $0x180] sm:$0xff] }
  0x1d   :  { %303 = vmatpush.msra.mxu0 %v61_v44  ;;  %326 = vmatpush.msra.mxu1 %v65_v45  ;;  %v81_v61 = vld [vmem:[%s5257_s1 + $0x1a8] sm:$0xff]  ;;  %v80_v1 = vld [vmem:[%s5257_s1 + $0x1a0] sm:$0xff]  ;;  %v476_v4 = vld [vmem:[%s5258_s2 + $0x18] sm:$0xff] }
  0x1e   :  { %349 = vmatpush.msra.mxu2 %v69_v46  ;;  %372 = vmatpush.msra.mxu3 %v73_v47  ;;  %v85_v62 = vld [vmem:[%s5257_s1 + $0x1c8] sm:$0xff]  ;;  %v84_v2 = vld [vmem:[%s5257_s1 + $0x1c0] sm:$0xff]  ;;  %v480_v5 = vld [vmem:[%s5258_s2 + $0x38] sm:$0xff] }
  0x1f   :  { %304 = vmatpush.msra.mxu0 %v60_v48  ;;  %327 = vmatpush.msra.mxu1 %v64_v49  ;;  %v89_v63 = vld [vmem:[%s5257_s1 + $0x1e8] sm:$0xff]  ;;  %v88_v3 = vld [vmem:[%s5257_s1 + $0x1e0] sm:$0xff]  ;;  %v484_v6 = vld [vmem:[%s5258_s2 + $0x58] sm:$0xff] }
  0x20   :  { %350 = vmatpush.msra.mxu2 %v68_v50  ;;  %373 = vmatpush.msra.mxu3 %v72_v51  ;;  %v488_v7 = vld [vmem:[%s5258_s2 + $0x78] sm:$0xff]  ;;  %v475_v8 = vld [vmem:[%s5258_s2 + $0x10] sm:$0xff]  ;;  %v474_v12 = vld [vmem:[%s5258_s2 + $0x8] sm:$0xff] }
  0x21   :  { %393 = vmatpush.msrb.mxu0 %v79_v52  ;;  %416 = vmatpush.msrb.mxu1 %v83_v53  ;;  %v479_v9 = vld [vmem:[%s5258_s2 + $0x30] sm:$0xff]  ;;  %v478_v13 = vld [vmem:[%s5258_s2 + $0x28] sm:$0xff]  ;;  %v473_v18 = vld [vmem:[%s5258_s2] sm:$0xff] }
  0x22   :  { %439 = vmatpush.msrb.mxu2 %v87_v54  ;;  %462 = vmatpush.msrb.mxu3 %v91_v55  ;;  %v483_v10 = vld [vmem:[%s5258_s2 + $0x50] sm:$0xff]  ;;  %v482_v14 = vld [vmem:[%s5258_s2 + $0x48] sm:$0xff]  ;;  %v477_v19 = vld [vmem:[%s5258_s2 + $0x20] sm:$0xff] }
  0x23   :  { %3343 = vmatmul.msk.f32.gmra.mxu0 %vm92_vm0, %v3875_v30  ;;  %3345 = vmatmul.msk.f32.gmra.mxu1 %vm92_vm0, %v3880_v31  ;;  %v487_v11 = vld [vmem:[%s5258_s2 + $0x70] sm:$0xff]  ;;  %v486_v15 = vld [vmem:[%s5258_s2 + $0x68] sm:$0xff]  ;;  %v481_v20 = vld [vmem:[%s5258_s2 + $0x40] sm:$0xff] }
  0x24   :  { %3347 = vmatmul.msk.f32.gmra.mxu2 %vm92_vm0, %v3875_v30  ;;  %3349 = vmatmul.msk.f32.gmra.mxu3 %vm92_vm0, %v3880_v31  ;;  %v485_v21 = vld [vmem:[%s5258_s2 + $0x60] sm:$0xff]  ;;  %v492_v22 = vld [vmem:[%s5258_s2 + $0x98] sm:$0xff]  ;;  %v491_v26 = vld [vmem:[%s5258_s2 + $0x90] sm:$0xff] }
  0x25   :  { %394 = vmatpush.msrb.mxu0 %v78_v56  ;;  %417 = vmatpush.msrb.mxu1 %v82_v57  ;;  %v496_v23 = vld [vmem:[%s5258_s2 + $0xb8] sm:$0xff]  ;;  %v495_v27 = vld [vmem:[%s5258_s2 + $0xb0] sm:$0xff]  ;;  %v490_v32 = vld [vmem:[%s5258_s2 + $0x88] sm:$0xff] }
  0x26   :  { %440 = vmatpush.msrb.mxu2 %v86_v58  ;;  %463 = vmatpush.msrb.mxu3 %v90_v59  ;;  %v500_v24 = vld [vmem:[%s5258_s2 + $0xd8] sm:$0xff]  ;;  %v499_v28 = vld [vmem:[%s5258_s2 + $0xd0] sm:$0xff]  ;;  %v494_v33 = vld [vmem:[%s5258_s2 + $0xa8] sm:$0xff] }
  0x27   :  { %395 = vmatpush.msrb.mxu0 %v77_v60  ;;  %418 = vmatpush.msrb.mxu1 %v81_v61  ;;  %v504_v25 = vld [vmem:[%s5258_s2 + $0xf8] sm:$0xff]  ;;  %v503_v29 = vld [vmem:[%s5258_s2 + $0xf0] sm:$0xff]  ;;  %v498_v34 = vld [vmem:[%s5258_s2 + $0xc8] sm:$0xff] }
  0x28   :  { %441 = vmatpush.msrb.mxu2 %v85_v62  ;;  %464 = vmatpush.msrb.mxu3 %v89_v63  ;;  %v502_v35 = vld [vmem:[%s5258_s2 + $0xe8] sm:$0xff]  ;;  %v489_v36 = vld [vmem:[%s5258_s2 + $0x80] sm:$0xff]  ;;  %v508_v40 = vld [vmem:[%s5258_s2 + $0x118] sm:$0xff] }
  0x29   :  { %396 = vmatpush.msrb.mxu0 %v76_v0  ;;  %419 = vmatpush.msrb.mxu1 %v80_v1  ;;  %v493_v37 = vld [vmem:[%s5258_s2 + $0xa0] sm:$0xff]  ;;  %v512_v41 = vld [vmem:[%s5258_s2 + $0x138] sm:$0xff]  ;;  %v507_v44 = vld [vmem:[%s5258_s2 + $0x110] sm:$0xff] }
  0x2a   :  { %442 = vmatpush.msrb.mxu2 %v84_v2  ;;  %465 = vmatpush.msrb.mxu3 %v88_v3  ;;  %v497_v38 = vld [vmem:[%s5258_s2 + $0xc0] sm:$0xff]  ;;  %v516_v42 = vld [vmem:[%s5258_s2 + $0x158] sm:$0xff]  ;;  %v511_v45 = vld [vmem:[%s5258_s2 + $0x130] sm:$0xff] }
  0x2b   :  { %3350 = vmatmul.msk.f32.vlgmr.msra.gmra.mxu0 %vm92_vm0, %v3821_v16  ;;  %3352 = vmatmul.msk.f32.vlgmr.msra.gmra.mxu1 %vm92_vm0, %v3826_v17  ;;  %v501_v39 = vld [vmem:[%s5258_s2 + $0xe0] sm:$0xff]  ;;  %v520_v43 = vld [vmem:[%s5258_s2 + $0x178] sm:$0xff]  ;;  %v515_v46 = vld [vmem:[%s5258_s2 + $0x150] sm:$0xff] }
  0x2c   :  { %3354 = vmatmul.msk.f32.vlgmr.msra.gmra.mxu2 %vm92_vm0, %v3821_v16  ;;  %3356 = vmatmul.msk.f32.vlgmr.msra.gmra.mxu3 %vm92_vm0, %v3826_v17  ;;  %v519_v47 = vld [vmem:[%s5258_s2 + $0x170] sm:$0xff]  ;;  %v506_v48 = vld [vmem:[%s5258_s2 + $0x108] sm:$0xff]  ;;  %v505_v52 = vld [vmem:[%s5258_s2 + $0x100] sm:$0xff] }
  0x2d   :  { %549 = vmatpush.msra.mxu0 %v476_v4  ;;  %572 = vmatpush.msra.mxu1 %v480_v5  ;;  %v510_v49 = vld [vmem:[%s5258_s2 + $0x128] sm:$0xff]  ;;  %v509_v53 = vld [vmem:[%s5258_s2 + $0x120] sm:$0xff]  ;;  %v524_v56 = vld [vmem:[%s5258_s2 + $0x198] sm:$0xff] }
  0x2e   :  { %595 = vmatpush.msra.mxu2 %v484_v6  ;;  %618 = vmatpush.msra.mxu3 %v488_v7  ;;  %v514_v50 = vld [vmem:[%s5258_s2 + $0x148] sm:$0xff]  ;;  %v513_v54 = vld [vmem:[%s5258_s2 + $0x140] sm:$0xff]  ;;  %v528_v57 = vld [vmem:[%s5258_s2 + $0x1b8] sm:$0xff] }
  0x2f   :  { %550 = vmatpush.msra.mxu0 %v475_v8  ;;  %573 = vmatpush.msra.mxu1 %v479_v9  ;;  %v518_v51 = vld [vmem:[%s5258_s2 + $0x168] sm:$0xff]  ;;  %v517_v55 = vld [vmem:[%s5258_s2 + $0x160] sm:$0xff]  ;;  %v532_v58 = vld [vmem:[%s5258_s2 + $0x1d8] sm:$0xff] }
  0x30   :  { %596 = vmatpush.msra.mxu2 %v483_v10  ;;  %619 = vmatpush.msra.mxu3 %v487_v11  ;;  %v536_v59 = vld [vmem:[%s5258_s2 + $0x1f8] sm:$0xff]  ;;  %v523_v60 = vld [vmem:[%s5258_s2 + $0x190] sm:$0xff]  ;;  %v522_v0 = vld [vmem:[%s5258_s2 + $0x188] sm:$0xff] }
  0x31   :  { %551 = vmatpush.msra.mxu0 %v474_v12  ;;  %574 = vmatpush.msra.mxu1 %v478_v13  ;;  %v527_v61 = vld [vmem:[%s5258_s2 + $0x1b0] sm:$0xff]  ;;  %v526_v1 = vld [vmem:[%s5258_s2 + $0x1a8] sm:$0xff]  ;;  %v521_v4 = vld [vmem:[%s5258_s2 + $0x180] sm:$0xff] }
  0x32   :  { %597 = vmatpush.msra.mxu2 %v482_v14  ;;  %620 = vmatpush.msra.mxu3 %v486_v15  ;;  %v531_v62 = vld [vmem:[%s5258_s2 + $0x1d0] sm:$0xff]  ;;  %v530_v2 = vld [vmem:[%s5258_s2 + $0x1c8] sm:$0xff]  ;;  %v525_v5 = vld [vmem:[%s5258_s2 + $0x1a0] sm:$0xff] }
  0x33   :  { %3351 = vmatmul.msk.f32.gmra.mxu0 %vm92_vm0, %v3875_v30  ;;  %3353 = vmatmul.msk.f32.gmra.mxu1 %vm92_vm0, %v3880_v31  ;;  %v535_v63 = vld [vmem:[%s5258_s2 + $0x1f0] sm:$0xff]  ;;  %v534_v3 = vld [vmem:[%s5258_s2 + $0x1e8] sm:$0xff]  ;;  %v529_v6 = vld [vmem:[%s5258_s2 + $0x1c0] sm:$0xff] }
  0x34   :  { %3355 = vmatmul.msk.f32.gmra.mxu2 %vm92_vm0, %v3875_v30  ;;  %3357 = vmatmul.msk.f32.gmra.mxu3 %vm92_vm0, %v3880_v31  ;;  %v533_v7 = vld [vmem:[%s5258_s2 + $0x1e0] sm:$0xff]  ;;  %v912_v8 = vld [vmem:[%s5259_s3 + $0x38] sm:$0xff]  ;;  %v911_v9 = vld [vmem:[%s5259_s3 + $0x30] sm:$0xff]  ;;  %s3734_s2 = smov 8  }
  0x35   :  { %552 = vmatpush.msra.mxu0 %v473_v18  ;;  %575 = vmatpush.msra.mxu1 %v477_v19  ;;  %v910_v10 = vld [vmem:[%s5259_s3 + $0x28] sm:$0xff]  ;;  %v908_v11 = vld [vmem:[%s5259_s3 + $0x18] sm:$0xff]  ;;  %v907_v13 = vld [vmem:[%s5259_s3 + $0x10] sm:$0xff] }
  0x36   :  { %598 = vmatpush.msra.mxu2 %v481_v20  ;;  %621 = vmatpush.msra.mxu3 %v485_v21  ;;  %v916_v12 = vld [vmem:[%s5259_s3 + $0x58] sm:$0xff]  ;;  %v909_v14 = vld [vmem:[%s5259_s3 + $0x20] sm:$0xff]  ;;  %v915_v15 = vld [vmem:[%s5259_s3 + $0x50] sm:$0xff] }
  0x37   :  { %v906_v18 = vld [vmem:[%s5259_s3 + $0x8] sm:$0xff]  ;;  %v905_v20 = vld [vmem:[%s5259_s3] sm:$0xff]  ;;  %v920_v21 = vld [vmem:[%s5259_s3 + $0x78] sm:$0xff] }
  0x38   :  { %v914_v19 = vld [vmem:[%s5259_s3 + $0x48] sm:$0xff] }
  0x3b   :  { %3358 = vmatmul.msk.f32.vlgmr.msrb.gmra.mxu0 %vm92_vm0, %v3821_v16  ;;  %3360 = vmatmul.msk.f32.vlgmr.msrb.gmra.mxu1 %vm92_vm0, %v3826_v17 }
  0x3c   :  { %3362 = vmatmul.msk.f32.vlgmr.msrb.gmra.mxu2 %vm92_vm0, %v3821_v16  ;;  %3364 = vmatmul.msk.f32.vlgmr.msrb.gmra.mxu3 %vm92_vm0, %v3826_v17 }
  0x3d   :  { %641 = vmatpush.msrb.mxu0 %v492_v22  ;;  %664 = vmatpush.msrb.mxu1 %v496_v23  ;;  %v913_v22 = vld [vmem:[%s5259_s3 + $0x40] sm:$0xff]  ;;  %v919_v23 = vld [vmem:[%s5259_s3 + $0x70] sm:$0xff] }
  0x3e   :  { %687 = vmatpush.msrb.mxu2 %v500_v24  ;;  %710 = vmatpush.msrb.mxu3 %v504_v25  ;;  %v918_v24 = vld [vmem:[%s5259_s3 + $0x68] sm:$0xff]  ;;  %v928_v25 = vld [vmem:[%s5259_s3 + $0xb8] sm:$0xff] }
  0x3f   :  { %642 = vmatpush.msrb.mxu0 %v491_v26  ;;  %665 = vmatpush.msrb.mxu1 %v495_v27  ;;  %v917_v26 = vld [vmem:[%s5259_s3 + $0x60] sm:$0xff]  ;;  %v927_v27 = vld [vmem:[%s5259_s3 + $0xb0] sm:$0xff] }
  0x40   :  { %688 = vmatpush.msrb.mxu2 %v499_v28  ;;  %711 = vmatpush.msrb.mxu3 %v503_v29  ;;  %v926_v28 = vld [vmem:[%s5259_s3 + $0xa8] sm:$0xff]  ;;  %v924_v29 = vld [vmem:[%s5259_s3 + $0x98] sm:$0xff] }
  0x41   :  { %643 = vmatpush.msrb.mxu0 %v490_v32  ;;  %666 = vmatpush.msrb.mxu1 %v494_v33  ;;  %v932_v32 = vld [vmem:[%s5259_s3 + $0xd8] sm:$0xff]  ;;  %v923_v33 = vld [vmem:[%s5259_s3 + $0x90] sm:$0xff] }
  0x42   :  { %689 = vmatpush.msrb.mxu2 %v498_v34  ;;  %712 = vmatpush.msrb.mxu3 %v502_v35  ;;  %v925_v34 = vld [vmem:[%s5259_s3 + $0xa0] sm:$0xff]  ;;  %v931_v35 = vld [vmem:[%s5259_s3 + $0xd0] sm:$0xff] }
  0x43   :  { %3359 = vmatmul.msk.f32.gmra.mxu0 %vm92_vm0, %v3875_v30  ;;  %3361 = vmatmul.msk.f32.gmra.mxu1 %vm92_vm0, %v3880_v31 }
  0x44   :  { %3363 = vmatmul.msk.f32.gmra.mxu2 %vm92_vm0, %v3875_v30  ;;  %3365 = vmatmul.msk.f32.gmra.mxu3 %vm92_vm0, %v3880_v31 }
  0x45   :  { %644 = vmatpush.msrb.mxu0 %v489_v36  ;;  %667 = vmatpush.msrb.mxu1 %v493_v37  ;;  %v922_v36 = vld [vmem:[%s5259_s3 + $0x88] sm:$0xff] }
  0x46   :  { %690 = vmatpush.msrb.mxu2 %v497_v38  ;;  %713 = vmatpush.msrb.mxu3 %v501_v39  ;;  %v930_v37 = vld [vmem:[%s5259_s3 + $0xc8] sm:$0xff]  ;;  %v921_v38 = vld [vmem:[%s5259_s3 + $0x80] sm:$0xff]  ;;  %v936_v39 = vld [vmem:[%s5259_s3 + $0xf8] sm:$0xff] }
  0x4b   :  { %3366 = vmatmul.msk.f32.vlgmr.msra.gmra.mxu0 %vm92_vm0, %v3821_v16  ;;  %3368 = vmatmul.msk.f32.vlgmr.msra.gmra.mxu1 %vm92_vm0, %v3826_v17 }
  0x4c   :  { %3370 = vmatmul.msk.f32.vlgmr.msra.gmra.mxu2 %vm92_vm0, %v3821_v16  ;;  %3372 = vmatmul.msk.f32.vlgmr.msra.gmra.mxu3 %vm92_vm0, %v3826_v17 }
  0x4d   :  { %733 = vmatpush.msra.mxu0 %v508_v40  ;;  %756 = vmatpush.msra.mxu1 %v512_v41  ;;  %v929_v40 = vld [vmem:[%s5259_s3 + $0xc0] sm:$0xff] }
  0x4e   :  { %779 = vmatpush.msra.mxu2 %v516_v42  ;;  %802 = vmatpush.msra.mxu3 %v520_v43  ;;  %v935_v43 = vld [vmem:[%s5259_s3 + $0xf0] sm:$0xff] }
  0x4f   :  { %734 = vmatpush.msra.mxu0 %v507_v44  ;;  %757 = vmatpush.msra.mxu1 %v511_v45  ;;  %v934_v44 = vld [vmem:[%s5259_s3 + $0xe8] sm:$0xff]  ;;  %v933_v45 = vld [vmem:[%s5259_s3 + $0xe0] sm:$0xff] }
  0x50   :  { %780 = vmatpush.msra.mxu2 %v515_v46  ;;  %803 = vmatpush.msra.mxu3 %v519_v47 }
  0x51   :  { %735 = vmatpush.msra.mxu0 %v506_v48  ;;  %758 = vmatpush.msra.mxu1 %v510_v49 }
  0x52   :  { %781 = vmatpush.msra.mxu2 %v514_v50  ;;  %804 = vmatpush.msra.mxu3 %v518_v51  ;;  %v940_v50 = vld [vmem:[%s5259_s3 + $0x118] sm:$0xff] }
  0x53   :  { %3367 = vmatmul.msk.f32.gmra.mxu0 %vm92_vm0, %v3875_v30  ;;  %3369 = vmatmul.msk.f32.gmra.mxu1 %vm92_vm0, %v3880_v31  ;;  %v944_v51 = vld [vmem:[%s5259_s3 + $0x138] sm:$0xff] }
  0x54   :  { %3371 = vmatmul.msk.f32.gmra.mxu2 %vm92_vm0, %v3875_v30  ;;  %3373 = vmatmul.msk.f32.gmra.mxu3 %vm92_vm0, %v3880_v31 }
  0x55   :  { %736 = vmatpush.msra.mxu0 %v505_v52  ;;  %759 = vmatpush.msra.mxu1 %v509_v53  ;;  %v939_v52 = vld [vmem:[%s5259_s3 + $0x110] sm:$0xff] }
  0x56   :  { %782 = vmatpush.msra.mxu2 %v513_v54  ;;  %805 = vmatpush.msra.mxu3 %v517_v55  ;;  %v943_v53 = vld [vmem:[%s5259_s3 + $0x130] sm:$0xff]  ;;  %v938_v54 = vld [vmem:[%s5259_s3 + $0x108] sm:$0xff] }
  0x57   :  { %v942_v55 = vld [vmem:[%s5259_s3 + $0x128] sm:$0xff] }
  0x5b   :  { %3374 = vmatmul.msk.f32.vlgmr.msrb.gmra.mxu0 %vm92_vm0, %v3821_v16  ;;  %3376 = vmatmul.msk.f32.vlgmr.msrb.gmra.mxu1 %vm92_vm0, %v3826_v17 }
  0x5c   :  { %3378 = vmatmul.msk.f32.vlgmr.msrb.gmra.mxu2 %vm92_vm0, %v3821_v16  ;;  %3380 = vmatmul.msk.f32.vlgmr.msrb.gmra.mxu3 %vm92_vm0, %v3826_v17 }
  0x5d   :  { %825 = vmatpush.msrb.mxu0 %v524_v56  ;;  %848 = vmatpush.msrb.mxu1 %v528_v57 }
  0x5e   :  { %871 = vmatpush.msrb.mxu2 %v532_v58  ;;  %894 = vmatpush.msrb.mxu3 %v536_v59  ;;  %v937_v58 = vld [vmem:[%s5259_s3 + $0x100] sm:$0xff] }
  0x5f   :  { %826 = vmatpush.msrb.mxu0 %v523_v60  ;;  %849 = vmatpush.msrb.mxu1 %v527_v61  ;;  %v941_v59 = vld [vmem:[%s5259_s3 + $0x120] sm:$0xff]  ;;  %v948_v60 = vld [vmem:[%s5259_s3 + $0x158] sm:$0xff] }
  0x60   :  { %872 = vmatpush.msrb.mxu2 %v531_v62  ;;  %895 = vmatpush.msrb.mxu3 %v535_v63  ;;  %v952_v63 = vld [vmem:[%s5259_s3 + $0x178] sm:$0xff] }
  0x61   :  { %827 = vmatpush.msrb.mxu0 %v522_v0  ;;  %850 = vmatpush.msrb.mxu1 %v526_v1  ;;  %v947_v0 = vld [vmem:[%s5259_s3 + $0x150] sm:$0xff] }
  0x62   :  { %873 = vmatpush.msrb.mxu2 %v530_v2  ;;  %896 = vmatpush.msrb.mxu3 %v534_v3  ;;  %v951_v1 = vld [vmem:[%s5259_s3 + $0x170] sm:$0xff]  ;;  %v946_v2 = vld [vmem:[%s5259_s3 + $0x148] sm:$0xff] }
  0x63   :  { %3375 = vmatmul.msk.f32.gmra.mxu0 %vm92_vm0, %v3875_v30  ;;  %3377 = vmatmul.msk.f32.gmra.mxu1 %vm92_vm0, %v3880_v31  ;;  %v950_v3 = vld [vmem:[%s5259_s3 + $0x168] sm:$0xff] }
  0x64   :  { %3379 = vmatmul.msk.f32.gmra.mxu2 %vm92_vm0, %v3875_v30  ;;  %3381 = vmatmul.msk.f32.gmra.mxu3 %vm92_vm0, %v3880_v31 }
  0x65   :  { %828 = vmatpush.msrb.mxu0 %v521_v4  ;;  %851 = vmatpush.msrb.mxu1 %v525_v5  ;;  %v945_v4 = vld [vmem:[%s5259_s3 + $0x140] sm:$0xff] }
  0x66   :  { %874 = vmatpush.msrb.mxu2 %v529_v6  ;;  %897 = vmatpush.msrb.mxu3 %v533_v7  ;;  %v949_v5 = vld [vmem:[%s5259_s3 + $0x160] sm:$0xff] }
  0x6b   :  { %3382 = vmatmul.msk.f32.vlgmr.msra.gmra.mxu0 %vm92_vm0, %v3821_v16  ;;  %3384 = vmatmul.msk.f32.vlgmr.msra.gmra.mxu1 %vm92_vm0, %v3826_v17 }
  0x6c   :  { %3386 = vmatmul.msk.f32.vlgmr.msra.gmra.mxu2 %vm92_vm0, %v3821_v16  ;;  %3388 = vmatmul.msk.f32.vlgmr.msra.gmra.mxu3 %vm92_vm0, %v3826_v17 }
  0x6d   :  { %1004 = vmatpush.msra.mxu1 %v912_v8  ;;  %981 = vmatpush.msra.mxu0 %v908_v11  ;;  %v960_v11 = vld [vmem:[%s5259_s3 + $0x1b8] sm:$0xff] }
  0x6e   :  { %1027 = vmatpush.msra.mxu2 %v916_v12  ;;  %1050 = vmatpush.msra.mxu3 %v920_v21  ;;  %v955_v12 = vld [vmem:[%s5259_s3 + $0x190] sm:$0xff]  ;;  %v957_v21 = vld [vmem:[%s5259_s3 + $0x1a0] sm:$0xff] }
  0x6f   :  { %1005 = vmatpush.msra.mxu1 %v911_v9  ;;  %982 = vmatpush.msra.mxu0 %v907_v13  ;;  %v959_v13 = vld [vmem:[%s5259_s3 + $0x1b0] sm:$0xff] }
  0x70   :  { %1028 = vmatpush.msra.mxu2 %v915_v15  ;;  %1051 = vmatpush.msra.mxu3 %v919_v23  ;;  %v958_v15 = vld [vmem:[%s5259_s3 + $0x1a8] sm:$0xff] }
  0x71   :  { %1006 = vmatpush.msra.mxu1 %v910_v10  ;;  %983 = vmatpush.msra.mxu0 %v906_v18  ;;  %v956_v10 = vld [vmem:[%s5259_s3 + $0x198] sm:$0xff] }
  0x72   :  { %1029 = vmatpush.msra.mxu2 %v914_v19  ;;  %1052 = vmatpush.msra.mxu3 %v918_v24 }
  0x73   :  { %3383 = vmatmul.msk.f32.gmra.mxu0 %vm92_vm0, %v3875_v30  ;;  %3385 = vmatmul.msk.f32.gmra.mxu1 %vm92_vm0, %v3880_v31 }
  0x74   :  { %3387 = vmatmul.msk.f32.gmra.mxu2 %vm92_vm0, %v3875_v30  ;;  %3389 = vmatmul.msk.f32.gmra.mxu3 %vm92_vm0, %v3880_v31 }
  0x75   :  { %1007 = vmatpush.msra.mxu1 %v909_v14  ;;  %984 = vmatpush.msra.mxu0 %v905_v20  ;;  %v954_v14 = vld [vmem:[%s5259_s3 + $0x188] sm:$0xff]  ;;  %v953_v20 = vld [vmem:[%s5259_s3 + $0x180] sm:$0xff] }
  0x76   :  { %1030 = vmatpush.msra.mxu2 %v913_v22  ;;  %1053 = vmatpush.msra.mxu3 %v917_v26  ;;  %v964_v22 = vld [vmem:[%s5259_s3 + $0x1d8] sm:$0xff]  ;;  %v963_v26 = vld [vmem:[%s5259_s3 + $0x1d0] sm:$0xff] }
  0x7b   :  { %3390 = vmatmul.msk.f32.vlgmr.msrb.gmra.mxu0 %vm92_vm0, %v3821_v16  ;;  %3392 = vmatmul.msk.f32.vlgmr.msrb.gmra.mxu1 %vm92_vm0, %v3826_v17 }
  0x7c   :  { %3394 = vmatmul.msk.f32.vlgmr.msrb.gmra.mxu2 %vm92_vm0, %v3821_v16  ;;  %3396 = vmatmul.msk.f32.vlgmr.msrb.gmra.mxu3 %vm92_vm0, %v3826_v17 }
  0x7d   :  { %1096 = vmatpush.msrb.mxu1 %v928_v25  ;;  %1073 = vmatpush.msrb.mxu0 %v924_v29  ;;  %v968_v25 = vld [vmem:[%s5259_s3 + $0x1f8] sm:$0xff]  ;;  %v966_v29 = vld [vmem:[%s5259_s3 + $0x1e8] sm:$0xff] }
  0x7e   :  { %1119 = vmatpush.msrb.mxu2 %v932_v32  ;;  %1142 = vmatpush.msrb.mxu3 %v936_v39  ;;  %v961_v32 = vld [vmem:[%s5259_s3 + $0x1c0] sm:$0xff] }
  0x7f   :  { %1097 = vmatpush.msrb.mxu1 %v927_v27  ;;  %1074 = vmatpush.msrb.mxu0 %v923_v33  ;;  %v967_v27 = vld [vmem:[%s5259_s3 + $0x1f0] sm:$0xff]  ;;  %v965_v33 = vld [vmem:[%s5259_s3 + $0x1e0] sm:$0xff] }
  0x80   :  { %1120 = vmatpush.msrb.mxu2 %v931_v35  ;;  %1143 = vmatpush.msrb.mxu3 %v935_v43 }
  0x81   :  { %1098 = vmatpush.msrb.mxu1 %v926_v28  ;;  %1075 = vmatpush.msrb.mxu0 %v922_v36  ;;  %v962_v28 = vld [vmem:[%s5259_s3 + $0x1c8] sm:$0xff] }
  0x82   :  { %1121 = vmatpush.msrb.mxu2 %v930_v37  ;;  %1144 = vmatpush.msrb.mxu3 %v934_v44 }
  0x83   :  { %3391 = vmatmul.msk.f32.gmra.mxu0 %vm92_vm0, %v3875_v30  ;;  %3393 = vmatmul.msk.f32.gmra.mxu1 %vm92_vm0, %v3880_v31 }
  0x84   :  { %3395 = vmatmul.msk.f32.gmra.mxu2 %vm92_vm0, %v3875_v30  ;;  %3397 = vmatmul.msk.f32.gmra.mxu3 %vm92_vm0, %v3880_v31 }
  0x85   :  { %1099 = vmatpush.msrb.mxu1 %v925_v34  ;;  %1076 = vmatpush.msrb.mxu0 %v921_v38 }
  0x86   :  { %1122 = vmatpush.msrb.mxu2 %v929_v40  ;;  %1145 = vmatpush.msrb.mxu3 %v933_v45 }
  0x87   :  { %v4389_v41 = vpop.f32.mrf.mxu0 }
  0x88   :  { %v4391_v42 = vpop.f32.mrf.mxu1 }
  0x8b   :  { %3400 = vmatmul.msk.f32.vlgmr.msra.gmra.mxu1 %vm92_vm0, %v3826_v17  ;;  %3398 = vmatmul.msk.f32.vlgmr.msra.gmra.mxu0 %vm92_vm0, %v3821_v16 }
  0x8c   :  { %3402 = vmatmul.msk.f32.vlgmr.msra.gmra.mxu2 %vm92_vm0, %v3821_v16  ;;  %3404 = vmatmul.msk.f32.vlgmr.msra.gmra.mxu3 %vm92_vm0, %v3826_v17 }
  0x8d   :  { %1165 = vmatpush.msra.mxu0 %v940_v50  ;;  %1188 = vmatpush.msra.mxu1 %v944_v51 }
  0x8e   :  { %1211 = vmatpush.msra.mxu2 %v948_v60  ;;  %1234 = vmatpush.msra.mxu3 %v952_v63 }
  0x8f   :  { %v4410_v46 = vpop.f32.mrf.mxu2  ;;  %v4412_v47 = vpop.f32.mrf.mxu3  ;;  %1166 = vmatpush.msra.mxu0 %v939_v52  ;;  %1189 = vmatpush.msra.mxu1 %v943_v53 }
  0x90   :  { %v4414_v48 = vpop.f32.mrf.mxu0  ;;  %v4416_v49 = vpop.f32.mrf.mxu1  ;;  %1212 = vmatpush.msra.mxu2 %v947_v0  ;;  %1235 = vmatpush.msra.mxu3 %v951_v1 }
  0x91   :  { %1167 = vmatpush.msra.mxu0 %v938_v54  ;;  %1190 = vmatpush.msra.mxu1 %v942_v55 }
  0x92   :  { %1213 = vmatpush.msra.mxu2 %v946_v2  ;;  %1236 = vmatpush.msra.mxu3 %v950_v3 }
  0x93   :  { %3401 = vmatmul.msk.f32.gmra.mxu1 %vm92_vm0, %v3880_v31  ;;  %3399 = vmatmul.msk.f32.gmra.mxu0 %vm92_vm0, %v3875_v30 }
  0x94   :  { %3403 = vmatmul.msk.f32.gmra.mxu2 %vm92_vm0, %v3875_v30  ;;  %3405 = vmatmul.msk.f32.gmra.mxu3 %vm92_vm0, %v3880_v31 }
  0x95   :  { %1168 = vmatpush.msra.mxu0 %v937_v58  ;;  %1191 = vmatpush.msra.mxu1 %v941_v59 }
  0x96   :  { %1214 = vmatpush.msra.mxu2 %v945_v4  ;;  %1237 = vmatpush.msra.mxu3 %v949_v5 }
  0x97   :  { %v4444_v56 = vpop.f32.mrf.mxu2  ;;  %v4446_v57 = vpop.f32.mrf.mxu3 }
  0x98   :  { %v4457_v61 = vpop.f32.mrf.mxu0  ;;  %v4459_v62 = vpop.f32.mrf.mxu1 }
  0x9b   :  { %3408 = vmatmul.msk.f32.vlgmr.msrb.gmra.mxu1 %vm92_vm0, %v3826_v17  ;;  %3406 = vmatmul.msk.f32.vlgmr.msrb.gmra.mxu0 %vm92_vm0, %v3821_v16 }
  0x9c   :  { %3410 = vmatmul.msk.f32.vlgmr.msrb.gmra.mxu2 %vm92_vm0, %v3821_v16  ;;  %3412 = vmatmul.msk.f32.vlgmr.msrb.gmra.mxu3 %vm92_vm0, %v3826_v17 }
  0x9d   :  { %1257 = vmatpush.msrb.mxu0 %v956_v10  ;;  %1280 = vmatpush.msrb.mxu1 %v960_v11 }
  0x9e   :  { %1303 = vmatpush.msrb.mxu2 %v964_v22  ;;  %1326 = vmatpush.msrb.mxu3 %v968_v25 }
  0x9f   :  { %v4490_v6 = vpop.f32.mrf.mxu2  ;;  %v4492_v7 = vpop.f32.mrf.mxu3  ;;  %1258 = vmatpush.msrb.mxu0 %v955_v12  ;;  %1281 = vmatpush.msrb.mxu1 %v959_v13 }
  0xa0   :  { %v4494_v8 = vpop.f32.mrf.mxu0  ;;  %v4496_v9 = vpop.f32.mrf.mxu1  ;;  %1304 = vmatpush.msrb.mxu2 %v963_v26  ;;  %1327 = vmatpush.msrb.mxu3 %v967_v27 }
  0xa1   :  { %1259 = vmatpush.msrb.mxu0 %v954_v14  ;;  %1282 = vmatpush.msrb.mxu1 %v958_v15 }
  0xa2   :  { %1305 = vmatpush.msrb.mxu2 %v962_v28  ;;  %1328 = vmatpush.msrb.mxu3 %v966_v29 }
  0xa3   :  { %3409 = vmatmul.msk.f32.gmra.mxu1 %vm92_vm0, %v3880_v31  ;;  %3407 = vmatmul.msk.f32.gmra.mxu0 %vm92_vm0, %v3875_v30 }
  0xa4   :  { %3411 = vmatmul.msk.f32.gmra.mxu2 %vm92_vm0, %v3875_v30  ;;  %3413 = vmatmul.msk.f32.gmra.mxu3 %vm92_vm0, %v3880_v31 }
  0xa5   :  { %1260 = vmatpush.msrb.mxu0 %v953_v20  ;;  %1283 = vmatpush.msrb.mxu1 %v957_v21 }
  0xa6   :  { %1306 = vmatpush.msrb.mxu2 %v961_v32  ;;  %1329 = vmatpush.msrb.mxu3 %v965_v33 }
  0xa7   :  { %v4524_v18 = vpop.f32.mrf.mxu2  ;;  %v4526_v19 = vpop.f32.mrf.mxu3 }
  0xa8   :  { %v4537_v23 = vpop.f32.mrf.mxu0  ;;  %v4539_v24 = vpop.f32.mrf.mxu1 }
  0xab   :  { %3414 = vmatmul.msk.f32.vlgmr.msra.gmra.mxu0 %vm92_vm0, %v3821_v16  ;;  %3416 = vmatmul.msk.f32.vlgmr.msra.gmra.mxu1 %vm92_vm0, %v3826_v17 }
  0xac   :  { %3418 = vmatmul.msk.f32.vlgmr.msra.gmra.mxu2 %vm92_vm0, %v3821_v16  ;;  %3420 = vmatmul.msk.f32.vlgmr.msra.gmra.mxu3 %vm92_vm0, %v3826_v17 }
  0xaf   :  { %v4570_v34 = vpop.f32.mrf.mxu2  ;;  %v4572_v35 = vpop.f32.mrf.mxu3 }
  0xb0   :  { %v4574_v36 = vpop.f32.mrf.mxu0  ;;  %v4576_v37 = vpop.f32.mrf.mxu1 }
  0xb3   :  { %3415 = vmatmul.msk.f32.gmra.mxu0 %vm92_vm0, %v3875_v30  ;;  %3417 = vmatmul.msk.f32.gmra.mxu1 %vm92_vm0, %v3880_v31 }
  0xb4   :  { %3419 = vmatmul.msk.f32.gmra.mxu2 %vm92_vm0, %v3875_v30  ;;  %3421 = vmatmul.msk.f32.gmra.mxu3 %vm92_vm0, %v3880_v31 }
  0xb7   :  { %v4586_v38 = vpop.f32.mrf.mxu2  ;;  %v4588_v39 = vpop.f32.mrf.mxu3 }
  0xb8   :  { %v4590_v40 = vpop.f32.mrf.mxu0  ;;  %v4592_v43 = vpop.f32.mrf.mxu1 }
  0xbb   :  { %3422 = vmatmul.msk.f32.vlgmr.msrb.gmra.mxu0 %vm92_vm0, %v3821_v16  ;;  %3424 = vmatmul.msk.f32.vlgmr.msrb.gmra.mxu1 %vm92_vm0, %v3826_v17 }
  0xbc   :  { %3426 = vmatmul.msk.f32.vlgmr.msrb.gmra.mxu2 %vm92_vm0, %v3821_v16  ;;  %3428 = vmatmul.msk.f32.vlgmr.msrb.gmra.mxu3 %vm92_vm0, %v3826_v17 }
  0xbf   :  { %v4602_v44 = vpop.f32.mrf.mxu2  ;;  %v4604_v45 = vpop.f32.mrf.mxu3 }
  0xc0   :  { %v4606_v50 = vpop.f32.mrf.mxu0  ;;  %v4608_v51 = vpop.f32.mrf.mxu1 }
  0xc3   :  { %3423 = vmatmul.msk.f32.gmra.mxu0 %vm92_vm0, %v3875_v30  ;;  %3425 = vmatmul.msk.f32.gmra.mxu1 %vm92_vm0, %v3880_v31 }
  0xc4   :  { %3427 = vmatmul.msk.f32.gmra.mxu2 %vm92_vm0, %v3875_v30  ;;  %3429 = vmatmul.msk.f32.gmra.mxu3 %vm92_vm0, %v3880_v31 }
  0xc7   :  { %v4618_v16 = vpop.f32.mrf.mxu2  ;;  %v4620_v17 = vpop.f32.mrf.mxu3 }
  0xc8   :  { %v554_v52 = vpop.f32.mrf.mxu0  ;;  %v577_v53 = vpop.f32.mrf.mxu1 }
  0xcf   :  { %v600_v54 = vpop.f32.mrf.mxu2  ;;  %v623_v55 = vpop.f32.mrf.mxu3 }
  0xd0   :  { %v557_v58 = vpop.f32.mrf.mxu0  ;;  %v580_v59 = vpop.f32.mrf.mxu1 }
  0xd1   :  { %3430 = vmatpush.xpose.msk.msra.mxu0 %vm1337_vm1, %v557_v58  ;;  %3434 = vmatpush.xpose.msk.msra.mxu1 %vm1337_vm1, %v580_v59 }
  0xd5   :  { %3431 = vmatpush.xpose.msk.msra.mxu0 %vm1337_vm1, %v554_v52  ;;  %3435 = vmatpush.xpose.msk.msra.mxu1 %vm1337_vm1, %v577_v53 }
  0xd7   :  { %v603_v30 = vpop.f32.mrf.mxu2  ;;  %v626_v31 = vpop.f32.mrf.mxu3 }
  0xd8   :  { %3438 = vmatpush.xpose.msk.msra.mxu2 %vm1337_vm1, %v603_v30  ;;  %3442 = vmatpush.xpose.msk.msra.mxu3 %vm1337_vm1, %v626_v31  ;;  %v646_v60 = vpop.f32.mrf.mxu0  ;;  %v669_v63 = vpop.f32.mrf.mxu1 }
  0xd9   :  { %3432 = vmatmul.msk.f32.vlgmr.msra.gmra.mxu0 %vm1337_vm1, %v4389_v41  ;;  %3436 = vmatmul.msk.f32.vlgmr.msra.gmra.mxu1 %vm1337_vm1, %v4391_v42 }
  0xdc   :  { %3439 = vmatpush.xpose.msk.msra.mxu2 %vm1337_vm1, %v600_v54  ;;  %3443 = vmatpush.xpose.msk.msra.mxu3 %vm1337_vm1, %v623_v55 }
  0xdf   :  { %v692_v0 = vpop.f32.mrf.mxu2  ;;  %v715_v1 = vpop.f32.mrf.mxu3  ;;  %3440 = vmatmul.msk.f32.vlgmr.msra.gmra.mxu2 %vm1337_vm1, %v4410_v46  ;;  %3444 = vmatmul.msk.f32.vlgmr.msra.gmra.mxu3 %vm1337_vm1, %v4412_v47 }
  0xe0   :  { %v649_v2 = vpop.f32.mrf.mxu0  ;;  %v672_v3 = vpop.f32.mrf.mxu1 }
  0xe1   :  { %3433 = vmatmul.msk.f32.gmra.mxu0 %vm1337_vm1, %v4414_v48  ;;  %3437 = vmatmul.msk.f32.gmra.mxu1 %vm1337_vm1, %v4416_v49 }
  0xe2   :  { %3446 = vmatpush.xpose.msk.msrb.mxu0 %vm1337_vm1, %v649_v2  ;;  %3450 = vmatpush.xpose.msk.msrb.mxu1 %vm1337_vm1, %v672_v3 }
  0xe6   :  { %3447 = vmatpush.xpose.msk.msrb.mxu0 %vm1337_vm1, %v646_v60  ;;  %3451 = vmatpush.xpose.msk.msrb.mxu1 %vm1337_vm1, %v669_v63 }
  0xe7   :  { %v695_v41 = vpop.f32.mrf.mxu2  ;;  %v718_v42 = vpop.f32.mrf.mxu3  ;;  %3441 = vmatmul.msk.f32.gmra.mxu2 %vm1337_vm1, %v4444_v56  ;;  %3445 = vmatmul.msk.f32.gmra.mxu3 %vm1337_vm1, %v4446_v57 }
  0xe8   :  { %3454 = vmatpush.xpose.msk.msrb.mxu2 %vm1337_vm1, %v695_v41  ;;  %3458 = vmatpush.xpose.msk.msrb.mxu3 %vm1337_vm1, %v718_v42  ;;  %v738_v46 = vpop.f32.mrf.mxu0  ;;  %v761_v47 = vpop.f32.mrf.mxu1 }
  0xe9   :  { %3448 = vmatmul.msk.f32.vlgmr.msrb.gmra.mxu0 %vm1337_vm1, %v4457_v61  ;;  %3452 = vmatmul.msk.f32.vlgmr.msrb.gmra.mxu1 %vm1337_vm1, %v4459_v62 }
  0xec   :  { %3455 = vmatpush.xpose.msk.msrb.mxu2 %vm1337_vm1, %v692_v0  ;;  %3459 = vmatpush.xpose.msk.msrb.mxu3 %vm1337_vm1, %v715_v1 }
  0xef   :  { %v784_v48 = vpop.f32.mrf.mxu2  ;;  %v807_v49 = vpop.f32.mrf.mxu3  ;;  %3456 = vmatmul.msk.f32.vlgmr.msrb.gmra.mxu2 %vm1337_vm1, %v4490_v6  ;;  %3460 = vmatmul.msk.f32.vlgmr.msrb.gmra.mxu3 %vm1337_vm1, %v4492_v7 }
  0xf0   :  { %v741_v56 = vpop.f32.mrf.mxu0  ;;  %v764_v57 = vpop.f32.mrf.mxu1 }
  0xf1   :  { %3449 = vmatmul.msk.f32.gmra.mxu0 %vm1337_vm1, %v4494_v8  ;;  %3453 = vmatmul.msk.f32.gmra.mxu1 %vm1337_vm1, %v4496_v9 }
  0xf2   :  { %3462 = vmatpush.xpose.msk.msra.mxu0 %vm1337_vm1, %v741_v56  ;;  %3466 = vmatpush.xpose.msk.msra.mxu1 %vm1337_vm1, %v764_v57 }
  0xf6   :  { %3463 = vmatpush.xpose.msk.msra.mxu0 %vm1337_vm1, %v738_v46  ;;  %3467 = vmatpush.xpose.msk.msra.mxu1 %vm1337_vm1, %v761_v47 }
  0xf7   :  { %v787_v61 = vpop.f32.mrf.mxu2  ;;  %v810_v62 = vpop.f32.mrf.mxu3  ;;  %3457 = vmatmul.msk.f32.gmra.mxu2 %vm1337_vm1, %v4524_v18  ;;  %3461 = vmatmul.msk.f32.gmra.mxu3 %vm1337_vm1, %v4526_v19 }
  0xf8   :  { %3470 = vmatpush.xpose.msk.msra.mxu2 %vm1337_vm1, %v787_v61  ;;  %3474 = vmatpush.xpose.msk.msra.mxu3 %vm1337_vm1, %v810_v62  ;;  %v830_v4 = vpop.f32.mrf.mxu0  ;;  %v853_v5 = vpop.f32.mrf.mxu1 }
  0xf9   :  { %3464 = vmatmul.msk.f32.vlgmr.msra.gmra.mxu0 %vm1337_vm1, %v4537_v23  ;;  %3468 = vmatmul.msk.f32.vlgmr.msra.gmra.mxu1 %vm1337_vm1, %v4539_v24 }
  0xfc   :  { %3471 = vmatpush.xpose.msk.msra.mxu2 %vm1337_vm1, %v784_v48  ;;  %3475 = vmatpush.xpose.msk.msra.mxu3 %vm1337_vm1, %v807_v49 }
  0xff   :  { %v876_v6 = vpop.f32.mrf.mxu2  ;;  %v899_v7 = vpop.f32.mrf.mxu3  ;;  %3472 = vmatmul.msk.f32.vlgmr.msra.gmra.mxu2 %vm1337_vm1, %v4570_v34  ;;  %3476 = vmatmul.msk.f32.vlgmr.msra.gmra.mxu3 %vm1337_vm1, %v4572_v35 }
 0x100   :  { %v833_v8 = vpop.f32.mrf.mxu0  ;;  %v856_v9 = vpop.f32.mrf.mxu1 }
 0x101   :  { %3465 = vmatmul.msk.f32.gmra.mxu0 %vm1337_vm1, %v4574_v36  ;;  %3469 = vmatmul.msk.f32.gmra.mxu1 %vm1337_vm1, %v4576_v37 }
 0x102   :  { %3478 = vmatpush.xpose.msk.msrb.mxu0 %vm1337_vm1, %v833_v8  ;;  %3482 = vmatpush.xpose.msk.msrb.mxu1 %vm1337_vm1, %v856_v9 }
 0x106   :  { %3479 = vmatpush.xpose.msk.msrb.mxu0 %vm1337_vm1, %v830_v4  ;;  %3483 = vmatpush.xpose.msk.msrb.mxu1 %vm1337_vm1, %v853_v5 }
 0x107   :  { %v879_v10 = vpop.f32.mrf.mxu2  ;;  %v902_v11 = vpop.f32.mrf.mxu3  ;;  %3473 = vmatmul.msk.f32.gmra.mxu2 %vm1337_vm1, %v4586_v38  ;;  %3477 = vmatmul.msk.f32.gmra.mxu3 %vm1337_vm1, %v4588_v39 }
 0x108   :  { %3486 = vmatpush.xpose.msk.msrb.mxu2 %vm1337_vm1, %v879_v10  ;;  %3490 = vmatpush.xpose.msk.msrb.mxu3 %vm1337_vm1, %v902_v11  ;;  %v1009_v12 = vpop.f32.mrf.mxu1  ;;  %v986_v13 = vpop.f32.mrf.mxu0 }
 0x109   :  { %3480 = vmatmul.msk.f32.vlgmr.msrb.gmra.mxu0 %vm1337_vm1, %v4590_v40  ;;  %3484 = vmatmul.msk.f32.vlgmr.msrb.gmra.mxu1 %vm1337_vm1, %v4592_v43 }
 0x10c   :  { %3487 = vmatpush.xpose.msk.msrb.mxu2 %vm1337_vm1, %v876_v6  ;;  %3491 = vmatpush.xpose.msk.msrb.mxu3 %vm1337_vm1, %v899_v7 }
 0x10f   :  { %3488 = vmatmul.msk.f32.vlgmr.msrb.gmra.mxu2 %vm1337_vm1, %v4602_v44  ;;  %3492 = vmatmul.msk.f32.vlgmr.msrb.gmra.mxu3 %vm1337_vm1, %v4604_v45  ;;  %v1032_v14 = vpop.f32.mrf.mxu2  ;;  %v1055_v15 = vpop.f32.mrf.mxu3 }
 0x110   :  { %v1012_v18 = vpop.f32.mrf.mxu1  ;;  %v989_v19 = vpop.f32.mrf.mxu0 }
 0x111   :  { %3481 = vmatmul.msk.f32.gmra.mxu0 %vm1337_vm1, %v4606_v50  ;;  %3485 = vmatmul.msk.f32.gmra.mxu1 %vm1337_vm1, %v4608_v51 }
 0x112   :  { %2300 = vmatpush.msra.mxu1 %v1012_v18  ;;  %2271 = vmatpush.msra.mxu0 %v989_v19 }
 0x114   :  { %2301 = vmatpush.msra.mxu1 %v1009_v12  ;;  %2272 = vmatpush.msra.mxu0 %v986_v13 }
 0x117   :  { %3489 = vmatmul.msk.f32.gmra.mxu2 %vm1337_vm1, %v4618_v16  ;;  %3493 = vmatmul.msk.f32.gmra.mxu3 %vm1337_vm1, %v4620_v17  ;;  %v1035_v20 = vpop.f32.mrf.mxu2  ;;  %v1058_v21 = vpop.f32.mrf.mxu3 }
 0x118   :  { %v1101_v22 = vpop.f32.mrf.mxu1  ;;  %v1078_v23 = vpop.f32.mrf.mxu0  ;;  %2329 = vmatpush.msra.mxu2 %v1035_v20  ;;  %2358 = vmatpush.msra.mxu3 %v1058_v21 }
 0x11a   :  { %2330 = vmatpush.msra.mxu2 %v1032_v14  ;;  %2359 = vmatpush.msra.mxu3 %v1055_v15 }
 0x11f   :  { %v1124_v24 = vpop.f32.mrf.mxu2  ;;  %v1147_v25 = vpop.f32.mrf.mxu3 }
 0x120   :  { %v1104_v26 = vpop.f32.mrf.mxu1  ;;  %v1081_v27 = vpop.f32.mrf.mxu0 }
 0x121   :  { %2416 = vmatpush.msrb.mxu1 %v1104_v26  ;;  %2387 = vmatpush.msrb.mxu0 %v1081_v27 }
 0x123   :  { %2417 = vmatpush.msrb.mxu1 %v1101_v22  ;;  %2388 = vmatpush.msrb.mxu0 %v1078_v23 }
 0x127   :  { %v1127_v28 = vpop.f32.mrf.mxu2  ;;  %v1150_v29 = vpop.f32.mrf.mxu3 }
 0x128   :  { %2445 = vmatpush.msrb.mxu2 %v1127_v28  ;;  %2474 = vmatpush.msrb.mxu3 %v1150_v29  ;;  %v4718_v32 = vpop.f32.mrf.mxu0  ;;  %v4720_v33 = vpop.f32.mrf.mxu1 }
 0x12a   :  { %2446 = vmatpush.msrb.mxu2 %v1124_v24  ;;  %2475 = vmatpush.msrb.mxu3 %v1147_v25 }
 0x12f   :  { %v4726_v36 = vpop.f32.mrf.mxu2  ;;  %v4728_v37 = vpop.f32.mrf.mxu3 }
 0x130   :  { %v4722_v34 = vpop.f32.mrf.mxu0  ;;  %v4724_v35 = vpop.f32.mrf.mxu1 }
 0x137   :  { %v4734_v40 = vpop.f32.mrf.mxu2  ;;  %v4736_v43 = vpop.f32.mrf.mxu3 }
 0x138   :  { %v4730_v38 = vpop.f32.mrf.mxu0  ;;  %v4732_v39 = vpop.f32.mrf.mxu1 }
 0x13f   :  { %v4742_v50 = vpop.f32.mrf.mxu2  ;;  %v4744_v51 = vpop.f32.mrf.mxu3 }
 0x140   :  { %v4738_v44 = vpop.f32.mrf.mxu0  ;;  %v4740_v45 = vpop.f32.mrf.mxu1 }
 0x147   :  { %v4752_v53 = vpop.f32.mrf.mxu2  ;;  %v4754_v54 = vpop.f32.mrf.mxu3 }
 0x156   :  { %v4746_v16 = vpop.f32.mrf.mxu0  ;;  %v4748_v17 = vpop.f32.mrf.mxu1 }
 0x157   :  { %v1899_v52 = vsel %vm1898_vm2, %v4746_v16, -inf  ;;  %v1905_v30 = vsel %vm1898_vm2, %v4748_v17, -inf }
 0x158   :  { %1900 = vmax.xlane.f32.xlu2 %v1899_v52 }
 0x15e   :  { %v4756_v55 = vpop.f32.mrf.mxu0  ;;  %v4758_v58 = vpop.f32.mrf.mxu1 }
 0x15f   :  { %v1908_v59 = vsel %vm1898_vm2, %v4758_v58, -inf  ;;  %v1902_v3 = vsel %vm1898_vm2, %v4756_v55, -inf }
 0x160   :  { %1909 = vmax.xlane.f32.xlu0 %v1908_v59  ;;  %1906 = vmax.xlane.f32.xlu2 %v1905_v30 }
 0x162   :  { %v4764_v31 = vpop.f32.mrf.mxu2  ;;  %v4766_v60 = vpop.f32.mrf.mxu3 }
 0x163   :  { %v1911_v2 = vsel %vm1898_vm2, %v4764_v31, -inf  ;;  %v1917_v48 = vsel %vm1898_vm2, %v4766_v60, -inf }
 0x166   :  { %v4768_v63 = vpop.f32.mrf.mxu0  ;;  %v4770_v0 = vpop.f32.mrf.mxu1 }
 0x167   :  { %v1929_v1 = vsel %vm1898_vm2, %v4770_v0, -inf  ;;  %v1923_v5 = vsel %vm1898_vm2, %v4768_v63, -inf }
 0x168   :  { %1930 = vmax.xlane.f32.xlu1 %v1929_v1  ;;  %1912 = vmax.xlane.f32.xlu0 %v1911_v2 }
 0x169   :  { %1903 = vmax.xlane.f32.xlu2 %v1902_v3 }
 0x16a   :  { %v4778_v41 = vpop.f32.mrf.mxu2  ;;  %v4780_v42 = vpop.f32.mrf.mxu3 }
 0x16b   :  { %v1914_v49 = vsel %vm1898_vm2, %v4778_v41, -inf  ;;  %v1920_v4 = vsel %vm1898_vm2, %v4780_v42, -inf }
 0x16e   :  { %v4782_v46 = vpop.f32.mrf.mxu0  ;;  %v4784_v47 = vpop.f32.mrf.mxu1 }
 0x16f   :  { %v1932_v56 = vsel %vm1898_vm2, %v4784_v47, -inf  ;;  %v1926_v10 = vsel %vm1898_vm2, %v4782_v46, -inf }
 0x170   :  { %1918 = vmax.xlane.f32.xlu0 %v1917_v48  ;;  %1915 = vmax.xlane.f32.xlu1 %v1914_v49 }
 0x171   :  { %1933 = vmax.xlane.f32.xlu2 %v1932_v56 }
 0x172   :  { %v4792_v57 = vpop.f32.mrf.mxu2  ;;  %v4794_v61 = vpop.f32.mrf.mxu3 }
 0x173   :  { %v1935_v9 = vsel %vm1898_vm2, %v4792_v57, -inf  ;;  %v1941_v18 = vsel %vm1898_vm2, %v4794_v61, -inf }
 0x176   :  { %v4796_v62 = vpop.f32.mrf.mxu0  ;;  %v4816_v13 = vpop.f32.mrf.mxu1 }
 0x177   :  { %v1947_v6 = vsel %vm1898_vm2, %v4796_v62, -inf  ;;  %v1953_v15 = vsel %vm1898_vm2, %v4816_v13, -inf }
 0x178   :  { %1921 = vmax.xlane.f32.xlu1 %v1920_v4  ;;  %1924 = vmax.xlane.f32.xlu0 %v1923_v5 }
 0x179   :  { %1948 = vmax.xlane.f32.xlu2 %v1947_v6 }
 0x17a   :  { %v4804_v7 = vpop.f32.mrf.mxu3  ;;  %v4806_v8 = vpop.f32.mrf.mxu2 }
 0x17b   :  { %v1944_v11 = vsel %vm1898_vm2, %v4804_v7, -inf  ;;  %v1938_v22 = vsel %vm1898_vm2, %v4806_v8, -inf }
 0x17e   :  { %v4828_v21 = vpop.f32.mrf.mxu0  ;;  %v4834_v24 = vpop.f32.mrf.mxu1 }
 0x17f   :  { %v1950_v23 = vsel %vm1898_vm2, %v4828_v21, -inf  ;;  %v1956_v27 = vsel %vm1898_vm2, %v4834_v24, -inf }
 0x180   :  { %1936 = vmax.xlane.f32.xlu0 %v1935_v9  ;;  %1927 = vmax.xlane.f32.xlu1 %v1926_v10 }
 0x181   :  { %1945 = vmax.xlane.f32.xlu2 %v1944_v11 }
 0x182   :  { %v4814_v12 = vpop.f32.mrf.mxu3  ;;  %v4818_v14 = vpop.f32.mrf.mxu2 }
 0x183   :  { %v1959_v19 = vsel %vm1898_vm2, %v4818_v14, -inf  ;;  %v1965_v28 = vsel %vm1898_vm2, %v4814_v12, -inf }
 0x186   :  { %v4848_v59 = vpop.f32.mrf.mxu0  ;;  %v4850_v30 = vpop.f32.mrf.mxu1 }
 0x187   :  { %v1977_v1 = vsel %vm1898_vm2, %v4850_v30, -inf  ;;  %v1971_v2 = vsel %vm1898_vm2, %v4848_v59, -inf }
 0x188   :  { %1954 = vmax.xlane.f32.xlu0 %v1953_v15  ;;  %1942 = vmax.xlane.f32.xlu1 %v1941_v18 }
 0x189   :  { %1960 = vmax.xlane.f32.xlu2 %v1959_v19 }
 0x18a   :  { %v4826_v20 = vpop.f32.mrf.mxu3  ;;  %v4856_v3 = vpop.f32.mrf.mxu2 }
 0x18b   :  { %v1968_v48 = vsel %vm1898_vm2, %v4826_v20, -inf  ;;  %v1962_v49 = vsel %vm1898_vm2, %v4856_v3, -inf }
 0x18e   :  { %v4862_v56 = vpop.f32.mrf.mxu0  ;;  %v4864_v4 = vpop.f32.mrf.mxu1 }
 0x18f   :  { %v1980_v5 = vsel %vm1898_vm2, %v4864_v4, -inf  ;;  %v1974_v6 = vsel %vm1898_vm2, %v4862_v56, -inf }
 0x190   :  { %1939 = vmax.xlane.f32.xlu1 %v1938_v22  ;;  %1951 = vmax.xlane.f32.xlu0 %v1950_v23 }
 0x192   :  { %v4836_v25 = vpop.f32.mrf.mxu3  ;;  %v4870_v9 = vpop.f32.mrf.mxu2 }
 0x193   :  { %v1989_v26 = vsel %vm1898_vm2, %v4836_v25, -inf  ;;  %v1983_v10 = vsel %vm1898_vm2, %v4870_v9, -inf }
 0x194   :  { %1990 = vmax.xlane.f32.xlu2 %v1989_v26 }
 0x198   :  { %1957 = vmax.xlane.f32.xlu1 %v1956_v27  ;;  %1966 = vmax.xlane.f32.xlu0 %v1965_v28 }
 0x19a   :  { %v4844_v29 = vpop.f32.mrf.mxu3  ;;  %v4874_v11 = vpop.f32.mrf.mxu2 }
 0x19b   :  { %v1992_v52 = vsel %vm1898_vm2, %v4844_v29, -inf  ;;  %v1986_v15 = vsel %vm1898_vm2, %v4874_v11, -inf }
 0x19c   :  { %1993 = vmax.xlane.f32.xlu2 %v1992_v52 }
 0x1a0   :  { %1978 = vmax.xlane.f32.xlu1 %v1977_v1  ;;  %1972 = vmax.xlane.f32.xlu0 %v1971_v2 }
 0x1a8   :  { %1969 = vmax.xlane.f32.xlu1 %v1968_v48  ;;  %1963 = vmax.xlane.f32.xlu0 %v1962_v49 }
 0x1b0   :  { %1981 = vmax.xlane.f32.xlu1 %v1980_v5  ;;  %1975 = vmax.xlane.f32.xlu0 %v1974_v6 }
 0x1b8   :  { %1984 = vmax.xlane.f32.xlu1 %v1983_v10 }
 0x1c0   :  { %1987 = vmax.xlane.f32.xlu1 %v1986_v15 }
 0x1cb   :  { %v1901_v18 = vpop.xlane.xlu2 %1900 }
 0x1cc   :  { %v1995_v19 = vsub.f32 %v4746_v16, %v1901_v18 }
 0x1ce   :  { %v2027_v22 = vmul.f32 1.442695, %v1995_v19 }
 0x1d0   :  { %3578 = vpow2.f32 %v2027_v22 }
 0x1d3   :  { %v1910_v23 = vpop.xlane.xlu0 %1909  ;;  %v1907_v26 = vpop.xlane.xlu2 %1906 }
 0x1d4   :  { %v1997_v27 = vsub.f32 %v4748_v17, %v1907_v26  ;;  %v1998_v1 = vsub.f32 %v4758_v58, %v1910_v23 }
 0x1d6   :  { %v4880_v28 = vpop.eup %3578  ;;  %v2031_v52 = vmul.f32 1.442695, %v1997_v27  ;;  %v2033_v48 = vmul.f32 1.442695, %v1998_v1 }
 0x1d7   :  { %v2091_v2 = vsel %vm1898_vm2, %v4880_v28, 0.0 }
 0x1d8   :  { %2092 = vadd.xlane.f32.xlu1 %v2091_v2  ;;  %3580 = vpow2.f32 %v2031_v52 }
 0x1d9   :  { %3582 = vpow2.f32 %v2033_v48 }
 0x1db   :  { %v1931_v49 = vpop.xlane.xlu1 %1930  ;;  %v1913_v5 = vpop.xlane.xlu0 %1912 }
 0x1dc   :  { %v1904_v16 = vpop.xlane.xlu2 %1903  ;;  %v1999_v17 = vsub.f32 %v4764_v31, %v1913_v5  ;;  %v2005_v52 = vsub.f32 %v4770_v0, %v1931_v49 }
 0x1dd   :  { %v1996_v6 = vsub.f32 %v4756_v55, %v1904_v16 }
 0x1de   :  { %v4886_v10 = vpop.eup %3580  ;;  %v2035_v18 = vmul.f32 1.442695, %v1999_v17 }
 0x1df   :  { %v2029_v15 = vmul.f32 1.442695, %v1996_v6  ;;  %v2097_v58 = vsel %vm1898_vm2, %v4886_v10, 0.0  ;;  %v4892_v27 = vpop.eup %3582 }
 0x1e0   :  { %2098 = vadd.xlane.f32.xlu2 %v2097_v58  ;;  %v2100_v48 = vsel %vm1898_vm2, %v4892_v27, 0.0 }
 0x1e1   :  { %3584 = vpow2.f32 %v2029_v15 }
 0x1e2   :  { %3586 = vpow2.f32 %v2035_v18 }
 0x1e3   :  { %v1919_v19 = vpop.xlane.xlu0 %1918  ;;  %v1916_v22 = vpop.xlane.xlu1 %1915 }
 0x1e4   :  { %v2001_v23 = vsub.f32 %v4766_v60, %v1919_v19  ;;  %v1934_v26 = vpop.xlane.xlu2 %1933  ;;  %v2047_v60 = vmul.f32 1.442695, %v2005_v52  ;;  %v2000_v18 = vsub.f32 %v4778_v41, %v1916_v22 }
 0x1e5   :  { %v2006_v55 = vsub.f32 %v4784_v47, %v1934_v26 }
 0x1e6   :  { %v2039_v1 = vmul.f32 1.442695, %v2001_v23 }
 0x1e7   :  { %v2049_v31 = vmul.f32 1.442695, %v2006_v55  ;;  %v4896_v2 = vpop.eup %3584 }
 0x1e8   :  { %3588 = vpow2.f32 %v2039_v1  ;;  %v2094_v5 = vsel %vm1898_vm2, %v4896_v2, 0.0  ;;  %2101 = vadd.xlane.f32.xlu2 %v2100_v48  ;;  %v4903_v6 = vpop.eup %3586 }
 0x1e9   :  { %3590 = vpow2.f32 %v2049_v31  ;;  %2095 = vadd.xlane.f32.xlu1 %v2094_v5  ;;  %v2103_v26 = vsel %vm1898_vm2, %v4903_v6, 0.0 }
 0x1ea   :  { %3592 = vpow2.f32 %v2047_v60 }
 0x1eb   :  { %v1922_v16 = vpop.xlane.xlu1 %1921  ;;  %v1925_v47 = vpop.xlane.xlu0 %1924 }
 0x1ec   :  { %v2003_v0 = vsub.f32 %v4768_v63, %v1925_v47  ;;  %v1949_v49 = vpop.xlane.xlu2 %1948  ;;  %v2002_v15 = vsub.f32 %v4780_v42, %v1922_v16  ;;  %v2037_v42 = vmul.f32 1.442695, %v2000_v18 }
 0x1ee   :  { %v4905_v17 = vpop.eup %3588  ;;  %v2043_v58 = vmul.f32 1.442695, %v2003_v0  ;;  %v2041_v55 = vmul.f32 1.442695, %v2002_v15 }
 0x1ef   :  { %v2109_v19 = vsel %vm1898_vm2, %v4905_v17, 0.0  ;;  %v4911_v23 = vpop.eup %3590 }
 0x1f0   :  { %2110 = vadd.xlane.f32.xlu0 %v2109_v19  ;;  %3594 = vpow2.f32 %v2043_v58  ;;  %v2124_v63 = vsel %vm1898_vm2, %v4911_v23, 0.0  ;;  %2104 = vadd.xlane.f32.xlu2 %v2103_v26  ;;  %v4917_v41 = vpop.eup %3592 }
 0x1f1   :  { %2125 = vadd.xlane.f32.xlu1 %v2124_v63  ;;  %3596 = vpow2.f32 %v2041_v55  ;;  %v2121_v16 = vsel %vm1898_vm2, %v4917_v41, 0.0  ;;  %v2011_v63 = vsub.f32 %v4796_v62, %v1949_v49 }
 0x1f2   :  { %3598 = vpow2.f32 %v2037_v42 }
 0x1f3   :  { %v1937_v52 = vpop.xlane.xlu0 %1936  ;;  %v1928_v1 = vpop.xlane.xlu1 %1927  ;;  %v2059_v62 = vmul.f32 1.442695, %v2011_v63 }
 0x1f4   :  { %v1946_v22 = vpop.xlane.xlu2 %1945  ;;  %v2007_v5 = vsub.f32 %v4792_v57, %v1937_v52 }
 0x1f5   :  { %v2010_v31 = vsub.f32 %v4804_v7, %v1946_v22 }
 0x1f6   :  { %v4920_v48 = vpop.eup %3594  ;;  %v2051_v0 = vmul.f32 1.442695, %v2007_v5 }
 0x1f7   :  { %v2057_v60 = vmul.f32 1.442695, %v2010_v31  ;;  %v2115_v47 = vsel %vm1898_vm2, %v4920_v48, 0.0  ;;  %v4927_v7 = vpop.eup %3596 }
 0x1f8   :  { %2122 = vadd.xlane.f32.xlu0 %v2121_v16  ;;  %2116 = vadd.xlane.f32.xlu2 %v2115_v47  ;;  %v4930_v26 = vpop.eup %3598  ;;  %v2112_v22 = vsel %vm1898_vm2, %v4927_v7, 0.0 }
 0x1f9   :  { %3600 = vpow2.f32 %v2057_v60 }
 0x1fa   :  { %3602 = vpow2.f32 %v2051_v0 }
 0x1fb   :  { %v1955_v15 = vpop.xlane.xlu0 %1954  ;;  %v1943_v58 = vpop.xlane.xlu1 %1942 }
 0x1fc   :  { %v2009_v18 = vsub.f32 %v4794_v61, %v1943_v58  ;;  %v1961_v19 = vpop.xlane.xlu2 %1960  ;;  %v2013_v42 = vsub.f32 %v4816_v13, %v1955_v15  ;;  %v2106_v61 = vsel %vm1898_vm2, %v4930_v26, 0.0  ;;  %v2004_v15 = vsub.f32 %v4782_v46, %v1928_v1 }
 0x1fd   :  { %v2015_v57 = vsub.f32 %v4818_v14, %v1961_v19 }
 0x1fe   :  { %v2055_v55 = vmul.f32 1.442695, %v2009_v18  ;;  %v2063_v49 = vmul.f32 1.442695, %v2013_v42  ;;  %v2045_v46 = vmul.f32 1.442695, %v2004_v15 }
 0x1ff   :  { %v2067_v52 = vmul.f32 1.442695, %v2015_v57  ;;  %v4937_v31 = vpop.eup %3600 }
 0x200   :  { %2113 = vadd.xlane.f32.xlu0 %v2112_v22  ;;  %3604 = vpow2.f32 %v2055_v55  ;;  %2107 = vadd.xlane.f32.xlu2 %v2106_v61  ;;  %v2136_v14 = vsel %vm1898_vm2, %v4937_v31, 0.0  ;;  %v4944_v16 = vpop.eup %3602 }
 0x201   :  { %3606 = vpow2.f32 %v2067_v52  ;;  %2137 = vadd.xlane.f32.xlu1 %v2136_v14  ;;  %v2127_v57 = vsel %vm1898_vm2, %v4944_v16, 0.0 }
 0x202   :  { %3608 = vpow2.f32 %v2059_v62 }
 0x203   :  { %v1940_v13 = vpop.xlane.xlu1 %1939  ;;  %v1952_v5 = vpop.xlane.xlu0 %1951  ;;  %3610 = vpow2.f32 %v2063_v49 }
 0x204   :  { %v2008_v60 = vsub.f32 %v4806_v8, %v1940_v13 }
 0x206   :  { %v2053_v47 = vmul.f32 1.442695, %v2008_v60  ;;  %v4946_v0 = vpop.eup %3604 }
 0x207   :  { %v1991_v58 = vpop.xlane.xlu2 %1990  ;;  %v4949_v18 = vpop.eup %3606  ;;  %v2133_v8 = vsel %vm1898_vm2, %v4946_v0, 0.0 }
 0x208   :  { %3612 = vpow2.f32 %v2053_v47  ;;  %v2025_v19 = vsub.f32 %v4836_v25, %v1991_v58  ;;  %2128 = vadd.xlane.f32.xlu2 %v2127_v57  ;;  %v2151_v63 = vsel %vm1898_vm2, %v4949_v18, 0.0  ;;  %2134 = vadd.xlane.f32.xlu0 %v2133_v8  ;;  %v4958_v42 = vpop.eup %3608 }
 0x209   :  { %2152 = vadd.xlane.f32.xlu1 %v2151_v63  ;;  %5265 = vst [vmem:[#allocation5_spill] sm:$0xff] %v4958_v42  ;;  %v4961_v22 = vpop.eup %3610  ;;  %3614 = vpow2.f32 %v2045_v46  ;;  %v2139_v13 = vsel %vm1898_vm2, %v4958_v42, 0.0 }
 0x20a   :  { %v2087_v52 = vmul.f32 1.442695, %v2025_v19  ;;  %v2145_v49 = vsel %vm1898_vm2, %v4961_v22, 0.0 }
 0x20b   :  { %v1958_v1 = vpop.xlane.xlu1 %1957  ;;  %v1967_v55 = vpop.xlane.xlu0 %1966 }
 0x20c   :  { %v2017_v25 = vsub.f32 %v4814_v12, %v1967_v55  ;;  %3616 = vpow2.f32 %v2087_v52 }
 0x20e   :  { %v4963_v61 = vpop.eup %3612  ;;  %v2071_v14 = vmul.f32 1.442695, %v2017_v25 }
 0x20f   :  { %v2130_v62 = vsel %vm1898_vm2, %v4963_v61, 0.0  ;;  %v4971_v47 = vpop.eup %3614  ;;  %v1994_v42 = vpop.xlane.xlu2 %1993 }
 0x210   :  { %3618 = vpow2.f32 %v2071_v14  ;;  %2146 = vadd.xlane.f32.xlu2 %v2145_v49  ;;  %2131 = vadd.xlane.f32.xlu0 %v2130_v62  ;;  %5266 = vst [vmem:[#allocation6_spill] sm:$0xff] %v4971_v47  ;;  %v2118_v57 = vsel %vm1898_vm2, %v4971_v47, 0.0  ;;  %v2012_v62 = vsub.f32 %v4828_v21, %v1952_v5 }
 0x211   :  { %2140 = vadd.xlane.f32.xlu1 %v2139_v13 }
 0x212   :  { %v4973_v15 = vpop.eup %3616  ;;  %v2061_v49 = vmul.f32 1.442695, %v2012_v62 }
 0x213   :  { %v1979_v12 = vpop.xlane.xlu1 %1978  ;;  %v1973_v60 = vpop.xlane.xlu0 %1972  ;;  %v2181_v8 = vsel %vm1898_vm2, %v4973_v15, 0.0 }
 0x216   :  { %v4975_v58 = vpop.eup %3618 }
 0x217   :  { %v2157_v19 = vsel %vm1898_vm2, %v4975_v58, 0.0 }
 0x218   :  { %2158 = vadd.xlane.f32.xlu2 %v2157_v19  ;;  %2119 = vadd.xlane.f32.xlu0 %v2118_v57  ;;  %v2026_v57 = vsub.f32 %v4844_v29, %v1994_v42 }
 0x219   :  { %2182 = vadd.xlane.f32.xlu1 %v2181_v8 }
 0x21a   :  { %v2089_v21 = vmul.f32 1.442695, %v2026_v57 }
 0x21b   :  { %v1970_v63 = vpop.xlane.xlu1 %1969  ;;  %v1964_v46 = vpop.xlane.xlu0 %1963 }
 0x21c   :  { %v2018_v55 = vsub.f32 %v4826_v20, %v1970_v63  ;;  %v2016_v52 = vsub.f32 %v4856_v3, %v1964_v46 }
 0x21e   :  { %v2073_v25 = vmul.f32 1.442695, %v2018_v55  ;;  %v2069_v14 = vmul.f32 1.442695, %v2016_v52  ;;  %v2014_v55 = vsub.f32 %v4834_v24, %v1958_v1  ;;  %v2019_v24 = vsub.f32 %v4848_v59, %v1973_v60 }
 0x220   :  { %3620 = vpow2.f32 %v2073_v25  ;;  %v2065_v25 = vmul.f32 1.442695, %v2014_v55 }
 0x221   :  { %3622 = vpow2.f32 %v2069_v14 }
 0x222   :  { %3624 = vpow2.f32 %v2061_v49 }
 0x223   :  { %v1982_v13 = vpop.xlane.xlu1 %1981  ;;  %v1976_v8 = vpop.xlane.xlu0 %1975  ;;  %3626 = vpow2.f32 %v2089_v21  ;;  %v2075_v21 = vmul.f32 1.442695, %v2019_v24 }
 0x224   :  { %v2020_v29 = vsub.f32 %v4862_v56, %v1976_v8  ;;  %v2022_v59 = vsub.f32 %v4864_v4, %v1982_v13 }
 0x226   :  { %v4986_v47 = vpop.eup %3620  ;;  %v2077_v14 = vmul.f32 1.442695, %v2020_v29  ;;  %v2081_v55 = vmul.f32 1.442695, %v2022_v59 }
 0x227   :  { %v4988_v19 = vpop.eup %3622  ;;  %v2160_v20 = vsel %vm1898_vm2, %v4986_v47, 0.0 }
 0x228   :  { %v2154_v3 = vsel %vm1898_vm2, %v4988_v19, 0.0  ;;  %2161 = vadd.xlane.f32.xlu0 %v2160_v20  ;;  %v4996_v46 = vpop.eup %3624 }
 0x229   :  { %2155 = vadd.xlane.f32.xlu2 %v2154_v3  ;;  %v2142_v42 = vsel %vm1898_vm2, %v4996_v46, 0.0  ;;  %v5003_v57 = vpop.eup %3626 }
 0x22a   :  { %v2184_v3 = vsel %vm1898_vm2, %v5003_v57, 0.0 }
 0x22b   :  { %v1985_v5 = vpop.xlane.xlu1 %1984 }
 0x22c   :  { %v2023_v63 = vsub.f32 %v4870_v9, %v1985_v5  ;;  %v2021_v9 = vsub.f32 %v4850_v30, %v1979_v12 }
 0x22e   :  { %v2083_v52 = vmul.f32 1.442695, %v2023_v63 }
 0x230   :  { %3628 = vpow2.f32 %v2083_v52 }
 0x231   :  { %2143 = vadd.xlane.f32.xlu2 %v2142_v42  ;;  %3630 = vpow2.f32 %v2065_v25 }
 0x232   :  { %3632 = vpow2.f32 %v2077_v14 }
 0x233   :  { %v1988_v62 = vpop.xlane.xlu1 %1987 }
 0x234   :  { %v2024_v49 = vsub.f32 %v4874_v11, %v1988_v62  ;;  %v2079_v11 = vmul.f32 1.442695, %v2021_v9 }
 0x236   :  { %v5006_v20 = vpop.eup %3628  ;;  %v2085_v56 = vmul.f32 1.442695, %v2024_v49 }
 0x237   :  { %v2175_v1 = vsel %vm1898_vm2, %v5006_v20, 0.0  ;;  %v5013_v5 = vpop.eup %3630 }
 0x238   :  { %3634 = vpow2.f32 %v2085_v56  ;;  %2176 = vadd.xlane.f32.xlu0 %v2175_v1  ;;  %v5015_v30 = vpop.eup %3632  ;;  %v2148_v8 = vsel %vm1898_vm2, %v5013_v5, 0.0 }
 0x239   :  { %2185 = vadd.xlane.f32.xlu2 %v2184_v3  ;;  %3636 = vpow2.f32 %v2079_v11  ;;  %v2166_v63 = vsel %vm1898_vm2, %v5015_v30, 0.0 }
 0x23a   :  { %3638 = vpow2.f32 %v2075_v21 }
 0x23b   :  { %3640 = vpow2.f32 %v2081_v55 }
 0x23e   :  { %v5017_v12 = vpop.eup %3634 }
 0x23f   :  { %v2178_v60 = vsel %vm1898_vm2, %v5017_v12, 0.0  ;;  %v5026_v52 = vpop.eup %3636 }
 0x240   :  { %2179 = vadd.xlane.f32.xlu1 %v2178_v60  ;;  %2149 = vadd.xlane.f32.xlu0 %v2148_v8  ;;  %v5028_v29 = vpop.eup %3638  ;;  %v2169_v4 = vsel %vm1898_vm2, %v5026_v52, 0.0 }
 0x241   :  { %2167 = vadd.xlane.f32.xlu2 %v2166_v63  ;;  %v2163_v13 = vsel %vm1898_vm2, %v5028_v29, 0.0  ;;  %v5034_v25 = vpop.eup %3640 }
 0x242   :  { %v2172_v14 = vsel %vm1898_vm2, %v5034_v25, 0.0 }
 0x248   :  { %2170 = vadd.xlane.f32.xlu1 %v2169_v4  ;;  %2164 = vadd.xlane.f32.xlu0 %v2163_v13 }
 0x24b   :  { %v2093_v42 = vpop.xlane.xlu1 %2092 }
 0x24c   :  { %3642 = vrcp.f32 %v2093_v42 }
 0x250   :  { %2173 = vadd.xlane.f32.xlu0 %v2172_v14 }
 0x252   :  { %v3643_v62 = vpop.eup %3642 }
 0x253   :  { %v2219_v49 = vmul.f32 %v3643_v62, %v4880_v28  ;;  %v2099_v9 = vpop.xlane.xlu2 %2098 }
 0x254   :  { %3644 = vrcp.f32 %v2099_v9 }
 0x255   :  { %3494 = vmatmul.msk.f32.vlgmr.msra.gmra.mxu0 %vm1898_vm2, %v2219_v49 }
 0x256   :  { %2503 = vmatpush.msra.mxu0 %v4722_v34 }
 0x258   :  { %2504 = vmatpush.msra.mxu0 %v4718_v32 }
 0x25a   :  { %v3645_v24 = vpop.eup %3644 }
 0x25b   :  { %v2221_v56 = vmul.f32 %v3645_v24, %v4886_v10  ;;  %v2102_v1 = vpop.xlane.xlu2 %2101 }
 0x25c   :  { %v2096_v3 = vpop.xlane.xlu1 %2095  ;;  %3646 = vrcp.f32 %v2102_v1 }
 0x25d   :  { %3648 = vrcp.f32 %v2096_v3  ;;  %3496 = vmatmul.msk.f32.vlgmr.msra.gmra.mxu1 %vm1898_vm2, %v2221_v56 }
 0x25e   :  { %2532 = vmatpush.msra.mxu1 %v4724_v35 }
 0x260   :  { %2533 = vmatpush.msra.mxu1 %v4720_v33 }
 0x262   :  { %v3647_v28 = vpop.eup %3646 }
 0x263   :  { %v2111_v11 = vpop.xlane.xlu0 %2110  ;;  %v3649_v21 = vpop.eup %3648  ;;  %v2222_v32 = vmul.f32 %v3647_v28, %v4892_v27 }
 0x264   :  { %v2105_v59 = vpop.xlane.xlu2 %2104  ;;  %3650 = vrcp.f32 %v2111_v11  ;;  %v2220_v34 = vmul.f32 %v3649_v21, %v4896_v2  ;;  %v2126_v27 = vpop.xlane.xlu1 %2125  ;;  %v5267_v11 = vld [vmem:[#allocation6_spill] sm:$0xff] }
 0x265   :  { %3652 = vrcp.f32 %v2105_v59  ;;  %3497 = vmatmul.msk.f32.gmra.mxu1 %vm1898_vm2, %v2222_v32  ;;  %v5268_v32 = vld [vmem:[#allocation5_spill] sm:$0xff] }
 0x266   :  { %3495 = vmatmul.msk.f32.gmra.mxu0 %vm1898_vm2, %v2220_v34 }
 0x26a   :  { %v3651_v10 = vpop.eup %3650 }
 0x26b   :  { %v3653_v60 = vpop.eup %3652  ;;  %v2225_v35 = vmul.f32 %v3651_v10, %v4905_v17  ;;  %v2123_v8 = vpop.xlane.xlu0 %2122 }
 0x26c   :  { %v2223_v33 = vmul.f32 %v3653_v60, %v4903_v6  ;;  %v2117_v63 = vpop.xlane.xlu2 %2116  ;;  %3654 = vrcp.f32 %v2123_v8 }
 0x26d   :  { %3656 = vrcp.f32 %v2117_v63  ;;  %3500 = vmatmul.msk.f32.vlgmr.msra.gmra.mxu3 %vm1898_vm2, %v2225_v35 }
 0x26e   :  { %3498 = vmatmul.msk.f32.vlgmr.msra.gmra.mxu2 %vm1898_vm2, %v2223_v33  ;;  %2590 = vmatpush.msra.mxu3 %v4736_v43  ;;  %3658 = vrcp.f32 %v2126_v27 }
 0x26f   :  { %2561 = vmatpush.msra.mxu2 %v4734_v40 }
 0x270   :  { %2591 = vmatpush.msra.mxu3 %v4728_v37 }
 0x271   :  { %2562 = vmatpush.msra.mxu2 %v4726_v36 }
 0x272   :  { %v3655_v2 = vpop.eup %3654 }
 0x273   :  { %v3657_v17 = vpop.eup %3656  ;;  %v2229_v6 = vmul.f32 %v3655_v2, %v4917_v41  ;;  %v2114_v55 = vpop.xlane.xlu0 %2113 }
 0x274   :  { %v2227_v4 = vmul.f32 %v3657_v17, %v4920_v48  ;;  %v2108_v13 = vpop.xlane.xlu2 %2107  ;;  %3660 = vrcp.f32 %v2114_v55  ;;  %v3659_v36 = vpop.eup %3658 }
 0x275   :  { %3662 = vrcp.f32 %v2108_v13  ;;  %3504 = vmatmul.msk.f32.vlgmr.msrb.gmra.mxu1 %vm1898_vm2, %v2229_v6  ;;  %v2230_v41 = vmul.f32 %v3659_v36, %v4911_v23 }
 0x276   :  { %3502 = vmatmul.msk.f32.vlgmr.msrb.gmra.mxu0 %vm1898_vm2, %v2227_v4  ;;  %2648 = vmatpush.msrb.mxu1 %v4740_v45 }
 0x277   :  { %2619 = vmatpush.msrb.mxu0 %v4738_v44  ;;  %v2138_v44 = vpop.xlane.xlu1 %2137 }
 0x278   :  { %2649 = vmatpush.msrb.mxu1 %v4732_v39 }
 0x279   :  { %2620 = vmatpush.msrb.mxu0 %v4730_v38 }
 0x27a   :  { %v3661_v37 = vpop.eup %3660 }
 0x27b   :  { %v3663_v40 = vpop.eup %3662  ;;  %v2226_v43 = vmul.f32 %v3661_v37, %v4927_v7  ;;  %v2135_v42 = vpop.xlane.xlu0 %2134 }
 0x27c   :  { %v2129_v48 = vpop.xlane.xlu2 %2128  ;;  %v2224_v14 = vmul.f32 %v3663_v40, %v4930_v26 }
 0x27d   :  { %3664 = vrcp.f32 %v2129_v48  ;;  %3501 = vmatmul.msk.f32.gmra.mxu3 %vm1898_vm2, %v2226_v43  ;;  %3505 = vmatmul.msk.f32.gmra.mxu1 %vm1898_vm2, %v2230_v41 }
 0x27e   :  { %3499 = vmatmul.msk.f32.gmra.mxu2 %vm1898_vm2, %v2224_v14  ;;  %3666 = vrcp.f32 %v2135_v42 }
 0x27f   :  { %3668 = vrcp.f32 %v2138_v44  ;;  %v2153_v26 = vpop.xlane.xlu1 %2152 }
 0x283   :  { %v3665_v38 = vpop.eup %3664  ;;  %v2132_v7 = vpop.xlane.xlu0 %2131 }
 0x284   :  { %v2231_v39 = vmul.f32 %v3665_v38, %v4944_v16  ;;  %v2147_v45 = vpop.xlane.xlu2 %2146  ;;  %v3667_v23 = vpop.eup %3666 }
 0x285   :  { %3670 = vrcp.f32 %v2147_v45  ;;  %v2233_v62 = vmul.f32 %v3667_v23, %v4946_v0  ;;  %v3669_v49 = vpop.eup %3668 }
 0x286   :  { %3506 = vmatmul.msk.f32.vlgmr.msrb.gmra.mxu2 %vm1898_vm2, %v2231_v39  ;;  %3672 = vrcp.f32 %v2132_v7  ;;  %v2234_v1 = vmul.f32 %v3669_v49, %v4937_v31 }
 0x287   :  { %2677 = vmatpush.msrb.mxu2 %v4752_v53  ;;  %3508 = vmatmul.msk.f32.vlgmr.msrb.gmra.mxu3 %vm1898_vm2, %v2233_v62  ;;  %3674 = vrcp.f32 %v2153_v26 }
 0x288   :  { %2706 = vmatpush.msrb.mxu3 %v4754_v54 }
 0x289   :  { %2678 = vmatpush.msrb.mxu2 %v4742_v50 }
 0x28a   :  { %2707 = vmatpush.msrb.mxu3 %v4744_v51  ;;  %v2141_v51 = vpop.xlane.xlu1 %2140 }
 0x28b   :  { %v3671_v16 = vpop.eup %3670  ;;  %v2120_v24 = vpop.xlane.xlu0 %2119 }
 0x28c   :  { %v2237_v9 = vmul.f32 %v3671_v16, %v4961_v22  ;;  %v2159_v0 = vpop.xlane.xlu2 %2158  ;;  %v3673_v56 = vpop.eup %3672  ;;  %v2721_v16 = vld [vmem:[%s5260_s4 + $0x18] sm:$0xf] }
 0x28d   :  { %3676 = vrcp.f32 %v2159_v0  ;;  %v2232_v53 = vmul.f32 %v3673_v56, %v4963_v61  ;;  %v3675_v50 = vpop.eup %3674  ;;  %v2724_v0 = vld [vmem:[%s5260_s4 + $0x24] sm:$0xf] }
 0x28e   :  { %3512 = vmatmul.msk.f32.vlgmr.msra.gmra.mxu1 %vm1898_vm2, %v2237_v9  ;;  %3678 = vrcp.f32 %v2120_v24  ;;  %v2239_v28 = vmul.f32 %v3675_v50, %v4949_v18  ;;  %v2722_v9 = vld [vmem:[%s5260_s4 + $0x1c] sm:$0xf] }
 0x28f   :  { %3507 = vmatmul.msk.f32.gmra.mxu2 %vm1898_vm2, %v2232_v53  ;;  %3509 = vmatmul.msk.f32.gmra.mxu3 %vm1898_vm2, %v2234_v1  ;;  %3680 = vrcp.f32 %v2141_v51  ;;  %v2725_v51 = vld [vmem:[%s5260_s4 + $0x28] sm:$0xf] }
 0x292   :  { %v2183_v10 = vpop.xlane.xlu1 %2182 }
 0x293   :  { %v3677_v54 = vpop.eup %3676 }
 0x294   :  { %v3679_v3 = vpop.eup %3678  ;;  %v2241_v22 = vmul.f32 %v3677_v54, %v4975_v58  ;;  %v2726_v54 = vld [vmem:[%s5260_s4 + $0x2c] sm:$0xf] }
 0x295   :  { %v2228_v61 = vmul.f32 %v3679_v3, %v5267_v11  ;;  %v3681_v31 = vpop.eup %3680  ;;  %v2723_v3 = vld [vmem:[%s5260_s4 + $0x20] sm:$0xf] }
 0x296   :  { %v2235_v34 = vmul.f32 %v3681_v31, %v5268_v32 }
 0x297   :  { %3503 = vmatmul.msk.f32.gmra.mxu0 %vm1898_vm2, %v2228_v61  ;;  %3514 = vmatmul.msk.f32.vlgmr.msra.gmra.mxu2 %vm1898_vm2, %v2239_v28 }
 0x298   :  { %3516 = vmatmul.msk.f32.vlgmr.msra.gmra.mxu3 %vm1898_vm2, %v2241_v22 }
 0x29b   :  { %v2162_v21 = vpop.xlane.xlu0 %2161 }
 0x29c   :  { %v2156_v59 = vpop.xlane.xlu2 %2155  ;;  %3682 = vrcp.f32 %v2162_v21  ;;  %v2730_v21 = vld [vmem:[%s5260_s4 + $0x3c] sm:$0xf] }
 0x29d   :  { %3684 = vrcp.f32 %v2156_v59 }
 0x29e   :  { %3686 = vrcp.f32 %v2183_v10  ;;  %v2729_v10 = vld [vmem:[%s5260_s4 + $0x38] sm:$0xf] }
 0x29f   :  { %3510 = vmatmul.msk.f32.vlgmr.msra.gmra.mxu0 %vm1898_vm2, %v2235_v34 }
 0x2a2   :  { %v3683_v58 = vpop.eup %3682 }
 0x2a3   :  { %v3685_v18 = vpop.eup %3684  ;;  %v2242_v60 = vmul.f32 %v3683_v58, %v4986_v47 }
 0x2a4   :  { %v2144_v35 = vpop.xlane.xlu2 %2143  ;;  %v2240_v8 = vmul.f32 %v3685_v18, %v4988_v19  ;;  %v3687_v33 = vpop.eup %3686  ;;  %v2715_v19 = vld [vmem:[%s5260_s4] sm:$0xf] }
 0x2a5   :  { %3688 = vrcp.f32 %v2144_v35  ;;  %3517 = vmatmul.msk.f32.gmra.mxu3 %vm1898_vm2, %v2242_v60  ;;  %v2249_v27 = vmul.f32 %v3687_v33, %v4973_v15  ;;  %3526 = vmatpush.msk.msra.mxu0 %vm2737_vm3, %v2715_v19  ;;  %v2727_v35 = vld [vmem:[%s5260_s4 + $0x30] sm:$0xf] }
 0x2a6   :  { %3515 = vmatmul.msk.f32.gmra.mxu2 %vm1898_vm2, %v2240_v8  ;;  %v2728_v8 = vld [vmem:[%s5260_s4 + $0x34] sm:$0xf] }
 0x2ab   :  { %v3689_v63 = vpop.eup %3688  ;;  %v2177_v2 = vpop.xlane.xlu0 %2176 }
 0x2ac   :  { %v2186_v17 = vpop.xlane.xlu2 %2185  ;;  %3690 = vrcp.f32 %v2177_v2  ;;  %v2236_v6 = vmul.f32 %v3689_v63, %v4996_v46 }
 0x2ad   :  { %3692 = vrcp.f32 %v2186_v17  ;;  %3524 = vmatmul.msk.f32.vlgmr.msrb.gmra.mxu3 %vm1898_vm2, %v2249_v27 }
 0x2ae   :  { %3511 = vmatmul.msk.f32.gmra.mxu0 %vm1898_vm2, %v2236_v6 }
 0x2b2   :  { %v3691_v47 = vpop.eup %3690 }
 0x2b3   :  { %v3693_v55 = vpop.eup %3692  ;;  %v2247_v4 = vmul.f32 %v3691_v47, %v5006_v20  ;;  %v2180_v15 = vpop.xlane.xlu1 %2179  ;;  %v2716_v20 = vld [vmem:[%s5260_s4 + $0x4] sm:$0xf] }
 0x2b4   :  { %v2150_v13 = vpop.xlane.xlu0 %2149  ;;  %3694 = vrcp.f32 %v2180_v15  ;;  %v2250_v46 = vmul.f32 %v3693_v55, %v5003_v57  ;;  %3529 = vmatpush.msk.msra.mxu1 %vm2737_vm3, %v2716_v20  ;;  %v2168_v48 = vpop.xlane.xlu2 %2167 }
 0x2b5   :  { %3522 = vmatmul.msk.f32.vlgmr.msrb.gmra.mxu2 %vm1898_vm2, %v2247_v4  ;;  %3696 = vrcp.f32 %v2150_v13 }
 0x2b6   :  { %3525 = vmatmul.msk.f32.gmra.mxu3 %vm1898_vm2, %v2250_v46 }
 0x2ba   :  { %v3695_v36 = vpop.eup %3694 }
 0x2bb   :  { %v2171_v37 = vpop.xlane.xlu1 %2170  ;;  %v2248_v43 = vmul.f32 %v3695_v36, %v5017_v12  ;;  %v3697_v41 = vpop.eup %3696 }
 0x2bc   :  { %v2165_v40 = vpop.xlane.xlu0 %2164  ;;  %3698 = vrcp.f32 %v2171_v37  ;;  %v2238_v57 = vmul.f32 %v3697_v41, %v5013_v5 }
 0x2bd   :  { %3700 = vrcp.f32 %v2165_v40  ;;  %3523 = vmatmul.msk.f32.gmra.mxu2 %vm1898_vm2, %v2248_v43 }
 0x2be   :  { %3513 = vmatmul.msk.f32.gmra.mxu1 %vm1898_vm2, %v2238_v57  ;;  %3702 = vrcp.f32 %v2168_v48 }
 0x2c2   :  { %v3699_v42 = vpop.eup %3698 }
 0x2c3   :  { %v3701_v14 = vpop.eup %3700  ;;  %v2245_v12 = vmul.f32 %v3699_v42, %v5026_v52  ;;  %v2717_v52 = vld [vmem:[%s5260_s4 + $0x8] sm:$0xf] }
 0x2c4   :  { %v2174_v44 = vpop.xlane.xlu0 %2173  ;;  %v2243_v38 = vmul.f32 %v3701_v14, %v5028_v29  ;;  %v3703_v39 = vpop.eup %3702  ;;  %v2718_v29 = vld [vmem:[%s5260_s4 + $0xc] sm:$0xf]  ;;  %3532 = vmatpush.msk.msra.mxu2 %vm2737_vm3, %v2717_v52 }
 0x2c5   :  { %3704 = vrcp.f32 %v2174_v44  ;;  %v2244_v7 = vmul.f32 %v3703_v39, %v5015_v30  ;;  %3535 = vmatpush.msk.msra.mxu3 %vm2737_vm3, %v2718_v29  ;;  %v2719_v30 = vld [vmem:[%s5260_s4 + $0x10] sm:$0xf] }
 0x2c6   :  { %3518 = vmatmul.msk.f32.vlgmr.msrb.gmra.mxu0 %vm1898_vm2, %v2243_v38  ;;  %3520 = vmatmul.msk.f32.vlgmr.msrb.gmra.mxu1 %vm1898_vm2, %v2245_v12 }
 0x2c7   :  { %3538 = vmatpush.msk.msrb.mxu0 %vm2737_vm3, %v2719_v30  ;;  %3544 = vmatpush.msk.msrb.mxu2 %vm2737_vm3, %v2721_v16 }
 0x2c8   :  { %3547 = vmatpush.msk.msrb.mxu3 %vm2737_vm3, %v2722_v9 }
 0x2cb   :  { %v3705_v5 = vpop.eup %3704 }
 0x2cc   :  { %v2246_v45 = vmul.f32 %v3705_v5, %v5034_v25  ;;  %v2720_v25 = vld [vmem:[%s5260_s4 + $0x14] sm:$0xf] }
 0x2cd   :  { %3541 = vmatpush.msk.msrb.mxu1 %vm2737_vm3, %v2720_v25 }
 0x2ce   :  { %3519 = vmatmul.msk.f32.gmra.mxu0 %vm1898_vm2, %v2244_v7  ;;  %3521 = vmatmul.msk.f32.gmra.mxu1 %vm1898_vm2, %v2246_v45 }
 0x2d2   :  { %v2274_v23 = vpop.f32.mrf.mxu0 }
 0x2d6   :  { %3527 = vmatmul.msk.f32.vlgmr.msra.gmra.mxu0 %vm1337_vm1, %v2274_v23 }
 0x2d7   :  { %3550 = vmatpush.msk.msra.mxu0 %vm2737_vm3, %v2723_v3 }
 0x2da   :  { %v2303_v62 = vpop.f32.mrf.mxu1 }
 0x2db   :  { %3530 = vmatmul.msk.f32.vlgmr.msra.gmra.mxu1 %vm1337_vm1, %v2303_v62 }
 0x2dc   :  { %3553 = vmatpush.msk.msra.mxu1 %vm2737_vm3, %v2724_v0 }
 0x2e2   :  { %v2306_v26 = vpop.f32.mrf.mxu1 }
 0x2e3   :  { %v2277_v49 = vpop.f32.mrf.mxu0  ;;  %3531 = vmatmul.msk.f32.gmra.mxu1 %vm1337_vm1, %v2306_v26 }
 0x2e4   :  { %3528 = vmatmul.msk.f32.gmra.mxu0 %vm1337_vm1, %v2277_v49 }
 0x2f0   :  { %v2361_v24 = vpop.f32.mrf.mxu3 }
 0x2f1   :  { %v2332_v56 = vpop.f32.mrf.mxu2  ;;  %3536 = vmatmul.msk.f32.vlgmr.msra.gmra.mxu3 %vm1337_vm1, %v2361_v24 }
 0x2f2   :  { %3533 = vmatmul.msk.f32.vlgmr.msra.gmra.mxu2 %vm1337_vm1, %v2332_v56  ;;  %v2419_v53 = vpop.f32.mrf.mxu1  ;;  %3559 = vmatpush.msk.msra.mxu3 %vm2737_vm3, %v2726_v54 }
 0x2f3   :  { %v2390_v1 = vpop.f32.mrf.mxu0  ;;  %3542 = vmatmul.msk.f32.vlgmr.msrb.gmra.mxu1 %vm1337_vm1, %v2419_v53  ;;  %3556 = vmatpush.msk.msra.mxu2 %vm2737_vm3, %v2725_v51 }
 0x2f4   :  { %3539 = vmatmul.msk.f32.vlgmr.msrb.gmra.mxu0 %vm1337_vm1, %v2390_v1  ;;  %3565 = vmatpush.msk.msrb.mxu1 %vm2737_vm3, %v2728_v8 }
 0x2f5   :  { %3562 = vmatpush.msk.msrb.mxu0 %vm2737_vm3, %v2727_v35 }
 0x2fa   :  { %v2422_v50 = vpop.f32.mrf.mxu1 }
 0x2fb   :  { %3543 = vmatmul.msk.f32.gmra.mxu1 %vm1337_vm1, %v2422_v50 }
 0x300   :  { %v2364_v22 = vpop.f32.mrf.mxu3 }
 0x301   :  { %v2335_v28 = vpop.f32.mrf.mxu2  ;;  %3537 = vmatmul.msk.f32.gmra.mxu3 %vm1337_vm1, %v2364_v22 }
 0x302   :  { %3534 = vmatmul.msk.f32.gmra.mxu2 %vm1337_vm1, %v2335_v28 }
 0x309   :  { %v2448_v11 = vpop.f32.mrf.mxu2 }
 0x30a   :  { %3545 = vmatmul.msk.f32.vlgmr.msrb.gmra.mxu2 %vm1337_vm1, %v2448_v11  ;;  %v2477_v61 = vpop.f32.mrf.mxu3 }
 0x30b   :  { %v2535_v31 = vpop.f32.mrf.mxu1  ;;  %3548 = vmatmul.msk.f32.vlgmr.msrb.gmra.mxu3 %vm1337_vm1, %v2477_v61  ;;  %3568 = vmatpush.msk.msrb.mxu2 %vm2737_vm3, %v2729_v10 }
 0x30c   :  { %3554 = vmatmul.msk.f32.vlgmr.msra.gmra.mxu1 %vm1337_vm1, %v2535_v31  ;;  %3571 = vmatpush.msk.msrb.mxu3 %vm2737_vm3, %v2730_v21 }
 0x312   :  { %v2451_v59 = vpop.f32.mrf.mxu2  ;;  %v2480_v32 = vpop.f32.mrf.mxu3 }
 0x313   :  { %3546 = vmatmul.msk.f32.gmra.mxu2 %vm1337_vm1, %v2451_v59  ;;  %3549 = vmatmul.msk.f32.gmra.mxu3 %vm1337_vm1, %v2480_v32 }
 0x314   :  { %v2393_v34 = vpop.f32.mrf.mxu0 }
 0x315   :  { %3540 = vmatmul.msk.f32.gmra.mxu0 %vm1337_vm1, %v2393_v34 }
 0x31a   :  { %v2564_v58 = vpop.f32.mrf.mxu2 }
 0x31b   :  { %v2593_v18 = vpop.f32.mrf.mxu3  ;;  %3557 = vmatmul.msk.f32.vlgmr.msra.gmra.mxu2 %vm1337_vm1, %v2564_v58 }
 0x31c   :  { %3560 = vmatmul.msk.f32.vlgmr.msra.gmra.mxu3 %vm1337_vm1, %v2593_v18  ;;  %v2506_v60 = vpop.f32.mrf.mxu0 }
 0x31d   :  { %3551 = vmatmul.msk.f32.vlgmr.msra.gmra.mxu0 %vm1337_vm1, %v2506_v60 }
 0x328   :  { %v2596_v33 = vpop.f32.mrf.mxu3 }
 0x329   :  { %v2567_v63 = vpop.f32.mrf.mxu2  ;;  %3561 = vmatmul.msk.f32.gmra.mxu3 %vm1337_vm1, %v2596_v33 }
 0x32a   :  { %3558 = vmatmul.msk.f32.gmra.mxu2 %vm1337_vm1, %v2567_v63 }
 0x32b   :  { %v2509_v27 = vpop.f32.mrf.mxu0 }
 0x32c   :  { %3552 = vmatmul.msk.f32.gmra.mxu0 %vm1337_vm1, %v2509_v27 }
 0x330   :  { %v2709_v2 = vpop.f32.mrf.mxu3 }
 0x331   :  { %3572 = vmatmul.msk.f32.vlgmr.msrb.gmra.mxu3 %vm1337_vm1, %v2709_v2 }
 0x338   :  { %v2680_v17 = vpop.f32.mrf.mxu2 }
 0x339   :  { %v2712_v6 = vpop.f32.mrf.mxu3  ;;  %3569 = vmatmul.msk.f32.vlgmr.msrb.gmra.mxu2 %vm1337_vm1, %v2680_v17 }
 0x33a   :  { %3573 = vmatmul.msk.f32.gmra.mxu3 %vm1337_vm1, %v2712_v6 }
 0x33b   :  { %v2538_v47 = vpop.f32.mrf.mxu1 }
 0x33c   :  { %3555 = vmatmul.msk.f32.gmra.mxu1 %vm1337_vm1, %v2538_v47 }
 0x340   :  { %v2683_v19 = vpop.f32.mrf.mxu2 }
 0x341   :  { %3570 = vmatmul.msk.f32.gmra.mxu2 %vm1337_vm1, %v2683_v19 }
 0x343   :  { %v2622_v55 = vpop.f32.mrf.mxu0  ;;  %v2651_v4 = vpop.f32.mrf.mxu1 }
 0x344   :  { %3563 = vmatmul.msk.f32.vlgmr.msrb.gmra.mxu0 %vm1337_vm1, %v2622_v55  ;;  %3566 = vmatmul.msk.f32.vlgmr.msrb.gmra.mxu1 %vm1337_vm1, %v2651_v4 }
 0x34b   :  { %v2625_v15 = vpop.f32.mrf.mxu0  ;;  %v2654_v13 = vpop.f32.mrf.mxu1 }
 0x34c   :  { %3564 = vmatmul.msk.f32.gmra.mxu0 %vm1337_vm1, %v2625_v15  ;;  %3567 = vmatmul.msk.f32.gmra.mxu1 %vm1337_vm1, %v2654_v13 }
 0x353   :  { %v2758_v40 = vpop.f32.mrf.mxu0 }
 0x354   :  { %v3244_v62 = vsel %vm92_vm0, %v2758_v40, 0.0 }
 0x358   :  { %v2790_v37 = vpop.f32.mrf.mxu1 }
 0x359   :  { %v3274_v23 = vsel %vm92_vm0, %v2790_v37, 0.0 }
 0x360   :  { %v2793_v57 = vpop.f32.mrf.mxu1 }
 0x361   :  { %v2761_v41 = vpop.f32.mrf.mxu0  ;;  %v3289_v11 = vsel %vm92_vm0, %v2793_v57, 0.0 }
 0x362   :  { %v3259_v18 = vsel %vm92_vm0, %v2761_v41, 0.0 }
 0x370   :  { %v2918_v12 = vpop.f32.mrf.mxu1 }
 0x371   :  { %v2886_v14 = vpop.f32.mrf.mxu0  ;;  %v3277_v0 = vsel %vm92_vm0, %v2918_v12, 0.0 }
 0x372   :  { %v3247_v53 = vsel %vm92_vm0, %v2886_v14, 0.0 }
 0x374   :  { %v2854_v46 = vpop.f32.mrf.mxu3 }
 0x375   :  { %v2822_v36 = vpop.f32.mrf.mxu2  ;;  %v3275_v30 = vsel %vm92_vm0, %v2854_v46, 0.0 }
 0x376   :  { %v3245_v25 = vsel %vm92_vm0, %v2822_v36, 0.0  ;;  %v3276_v26 = vadd.f32 %v3275_v30, %v3274_v23  ;;  %v3577_v36 = vld [vmem:[%s5261_s5] ss:$0 sm:$0xff]  ;;  %s3732_s5 = smov [#allocation2]  }
 0x377   :  { %v3246_v16 = vadd.f32 %v3245_v25, %v3244_v62  ;;  %s3320_s29 = sshll.u32 %s3732_s5, 4  ;;  %s3321_s29 = int_to_ptr.vmem [resolvable:$true] %s3320_s29 }
 0x378   :  { %v2921_v5 = vpop.f32.mrf.mxu1  ;;  %v3278_v50 = vadd.f32 %v3277_v0, %v3276_v26 }
 0x379   :  { %v3248_v3 = vadd.f32 %v3247_v53, %v3246_v16  ;;  %v3292_v33 = vsel %vm92_vm0, %v2921_v5, 0.0 }
 0x384   :  { %v2857_v43 = vpop.f32.mrf.mxu3 }
 0x385   :  { %v2825_v20 = vpop.f32.mrf.mxu2  ;;  %v3290_v54 = vsel %vm92_vm0, %v2857_v43, 0.0 }
 0x386   :  { %v3260_v31 = vsel %vm92_vm0, %v2825_v20, 0.0  ;;  %v3291_v21 = vadd.f32 %v3290_v54, %v3289_v11 }
 0x387   :  { %v3261_v63 = vadd.f32 %v3260_v31, %v3259_v18 }
 0x388   :  { %v3293_v47 = vadd.f32 %v3292_v33, %v3291_v21 }
 0x389   :  { %v3046_v29 = vpop.f32.mrf.mxu1 }
 0x38a   :  { %v3281_v32 = vsel %vm92_vm0, %v3046_v29, 0.0 }
 0x38d   :  { %v2950_v42 = vpop.f32.mrf.mxu2 }
 0x38e   :  { %v2982_v48 = vpop.f32.mrf.mxu3  ;;  %v3249_v1 = vsel %vm92_vm0, %v2950_v42, 0.0 }
 0x38f   :  { %v3279_v24 = vsel %vm92_vm0, %v2982_v48, 0.0  ;;  %v3250_v61 = vadd.f32 %v3249_v1, %v3248_v3 }
 0x390   :  { %v3280_v22 = vadd.f32 %v3279_v24, %v3278_v50 }
 0x392   :  { %v2889_v39 = vpop.f32.mrf.mxu0  ;;  %v3282_v35 = vadd.f32 %v3281_v32, %v3280_v22 }
 0x393   :  { %v3262_v60 = vsel %vm92_vm0, %v2889_v39, 0.0 }
 0x394   :  { %v3263_v15 = vadd.f32 %v3262_v60, %v3261_v63 }
 0x396   :  { %v2985_v44 = vpop.f32.mrf.mxu3  ;;  %v2953_v38 = vpop.f32.mrf.mxu2 }
 0x397   :  { %v3294_v27 = vsel %vm92_vm0, %v2985_v44, 0.0  ;;  %v3264_v6 = vsel %vm92_vm0, %v2953_v38, 0.0 }
 0x398   :  { %v3295_v40 = vadd.f32 %v3294_v27, %v3293_v47  ;;  %v3265_v57 = vadd.f32 %v3264_v6, %v3263_v15 }
 0x39a   :  { %v3014_v52 = vpop.f32.mrf.mxu0 }
 0x39b   :  { %v3251_v28 = vsel %vm92_vm0, %v3014_v52, 0.0 }
 0x39c   :  { %v3252_v34 = vadd.f32 %v3251_v28, %v3250_v61 }
 0x39e   :  { %v3078_v7 = vpop.f32.mrf.mxu2 }
 0x39f   :  { %v3110_v45 = vpop.f32.mrf.mxu3  ;;  %v3253_v59 = vsel %vm92_vm0, %v3078_v7, 0.0 }
 0x3a0   :  { %v3283_v10 = vsel %vm92_vm0, %v3110_v45, 0.0  ;;  %v3254_v2 = vadd.f32 %v3253_v59, %v3252_v34 }
 0x3a1   :  { %v3284_v19 = vadd.f32 %v3283_v10, %v3282_v35 }
 0x3a9   :  { %v3017_v56 = vpop.f32.mrf.mxu0 }
 0x3aa   :  { %v3266_v43 = vsel %vm92_vm0, %v3017_v56, 0.0 }
 0x3ab   :  { %v3267_v38 = vadd.f32 %v3266_v43, %v3265_v57 }
 0x3ac   :  { %v3113_v49 = vpop.f32.mrf.mxu3 }
 0x3ad   :  { %v3081_v9 = vpop.f32.mrf.mxu2  ;;  %v3298_v7 = vsel %vm92_vm0, %v3113_v49, 0.0 }
 0x3ae   :  { %v3268_v14 = vsel %vm92_vm0, %v3081_v9, 0.0 }
 0x3af   :  { %v3269_v45 = vadd.f32 %v3268_v14, %v3267_v38 }
 0x3b4   :  { %v3238_v8 = vpop.f32.mrf.mxu3 }
 0x3b5   :  { %v3287_v48 = vsel %vm92_vm0, %v3238_v8, 0.0 }
 0x3b9   :  { %v3049_v51 = vpop.f32.mrf.mxu1 }
 0x3ba   :  { %v3296_v13 = vsel %vm92_vm0, %v3049_v51, 0.0 }
 0x3bb   :  { %v3297_v12 = vadd.f32 %v3296_v13, %v3295_v40 }
 0x3bc   :  { %v3206_v58 = vpop.f32.mrf.mxu2 }
 0x3bd   :  { %v3257_v20 = vsel %vm92_vm0, %v3206_v58, 0.0  ;;  %v3241_v30 = vpop.f32.mrf.mxu3  ;;  %v3299_v62 = vadd.f32 %v3298_v7, %v3297_v12 }
 0x3be   :  { %v3302_v49 = vsel %vm92_vm0, %v3241_v30, 0.0 }
 0x3c1   :  { %v3142_v17 = vpop.f32.mrf.mxu0  ;;  %v3174_v4 = vpop.f32.mrf.mxu1 }
 0x3c2   :  { %v3255_v55 = vsel %vm92_vm0, %v3142_v17, 0.0  ;;  %v3285_v37 = vsel %vm92_vm0, %v3174_v4, 0.0 }
 0x3c3   :  { %v3256_v46 = vadd.f32 %v3255_v55, %v3254_v2  ;;  %v3286_v41 = vadd.f32 %v3285_v37, %v3284_v19 }
 0x3c4   :  { %v3209_v52 = vpop.f32.mrf.mxu2 }
 0x3c5   :  { %v3258_v42 = vadd.f32 %v3257_v20, %v3256_v46  ;;  %v3288_v44 = vadd.f32 %v3287_v48, %v3286_v41  ;;  %v3272_v9 = vsel %vm92_vm0, %v3209_v52, 0.0 }
 0x3c7   :  { %v3308_v39 = vadd.f32 %v3577_v36, %v3258_v42  ;;  %v3310_v5 = vadd.f32 %v3577_v36, %v3288_v44 }
 0x3c9   :  { %3312 = vst.msk [vmem:[#allocation2] sm:$0xff] %vm92_vm0, %v3308_v39  ;;  %v3145_v29 = vpop.f32.mrf.mxu0  ;;  %v3177_v23 = vpop.f32.mrf.mxu1 }
 0x3ca   :  { %3314 = vst.msk [vmem:[#allocation2 + $0x10] sm:$0xff] %vm92_vm0, %v3310_v5  ;;  %v3270_v25 = vsel %vm92_vm0, %v3145_v29, 0.0  ;;  %v3300_v16 = vsel %vm92_vm0, %v3177_v23, 0.0 }
 0x3cb   :  { %v3271_v26 = vadd.f32 %v3270_v25, %v3269_v45  ;;  %v3301_v0 = vadd.f32 %v3300_v16, %v3299_v62 }
 0x3cd   :  { %v3273_v24 = vadd.f32 %v3272_v9, %v3271_v26  ;;  %v3303_v56 = vadd.f32 %v3302_v49, %v3301_v0 }
 0x3cf   :  { %v3309_v53 = vadd.f32 %v3577_v36, %v3273_v24  ;;  %v3311_v1 = vadd.f32 %v3577_v36, %v3303_v56 }
 0x3d1   :  { %3313 = vst.msk [vmem:[#allocation2 + $0x8] sm:$0xff] %vm92_vm0, %v3309_v53 }
 0x3d2   :  { %3315 = vst.msk [vmem:[#allocation2 + $0x18] sm:$0xff] %vm92_vm0, %v3311_v1 }
 0x3d3   :  { %3328 = dma.vmem_to_hbm [thread:$0]  %s3321_s29, 512, %s3323_s8, [#allocation3], %s3733_s9, %s3733_s9, %s3734_s2  }
 0x3d4   :  { %3730 = dma.done.wait [#allocation3], 512  }
 0x3d5   :  { %3731 = vsyncadd [#allocation3], 4294966784 }
 0x3d6   :  { %3333 = vsyncpa [#allocation3], 1 }

</bundles_post_ra>
